<compile_context>
chip_gen: v7x
topology: tpu7x:2x2x1
jax: 0.10.0
libtpu: 0.0.40
codegen_flags: <defaults>
</compile_context>

<pallas_src>
import functools

import numpy as np

import jax
import jax.numpy as jnp
from jax import lax
from jax.experimental import pallas as pl
from jax.experimental.pallas import tpu as pltpu


def _ts2vec_loss_kernel(z1_ref, z2_ref, seg_ref, segT_ref, mask_ref, out_ref,
                        l_ref, sim_ref, inst_ref, *,
                        temperature, total_t, mxu_dtype):
    # z1_ref/z2_ref : (tT, B, F) input tiles, F = C*D lane-dense, rows t-major / b-minor
    # seg_ref       : (F, C) 0/1 lane->channel map             (mxu dtype)
    # segT_ref      : (C, F) 0/1 transpose                     (f32)
    # mask_ref      : (gB, gB) 0/1 same-t & off-batch mask     (f32)
    # out_ref       : (1, 1) f32 SMEM, written once on the last grid step
    # l_ref         : (B, C) f32 VMEM  -- running sum_t exp(sim_t - shift)
    # sim_ref       : (B, C) f32 VMEM  -- running sum_t sim_t
    # inst_ref      : (gB, 1) f32 VMEM -- running per-row instance-loss partials
    ti = pl.program_id(0)
    nt = pl.num_programs(0)

    tT, B, F = z1_ref.shape
    C = seg_ref.shape[1]
    N = tT * B
    gB = mask_ref.shape[0]
    g = gB // B
    K = tT // g                       # instance groups per tile (wrapper guarantees tT % g == 0)

    inv_temp = jnp.float32(1.0 / temperature)
    shift = jnp.float32(1.0 / temperature)   # static bound of cos/tau -> exp(sim - shift) <= ~1
    eps2 = jnp.float32(1e-24)                # (F.normalize eps = 1e-12) ** 2

    @pl.when(ti == 0)
    def _():
        l_ref[...] = jnp.zeros_like(l_ref)
        sim_ref[...] = jnp.zeros_like(sim_ref)
        inst_ref[...] = jnp.zeros_like(inst_ref)

    # ---- load tile (bf16 inputs upcast), flatten to lane-dense rows (t-major, b-minor) -------
    z1 = z1_ref[...].astype(jnp.float32).reshape(N, F)
    z2 = z2_ref[...].astype(jnp.float32).reshape(N, F)

    # ---- fused segmented sums: one MXU pass over the shared seg RHS ---------------------------
    # rows 0..N-1: |z1|^2 per channel, N..2N-1: |z2|^2, 2N..3N-1: <z1, z2> per channel.
    prods = jnp.concatenate([z1 * z1, z2 * z2, z1 * z2], axis=0)            # (3N, F) f32
    sums = jnp.dot(prods.astype(mxu_dtype), seg_ref[...],
                   preferred_element_type=jnp.float32)                      # (3N, C) f32
    ssq1 = sums[0:N]
    ssq2 = sums[N:2 * N]
    cross = sums[2 * N:3 * N]
    inv1 = lax.rsqrt(jnp.maximum(ssq1, eps2))                               # == 1 / max(||.||, eps)
    inv2 = lax.rsqrt(jnp.maximum(ssq2, eps2))

    # ---- temporal loss: sims are now elementwise; shift-based running sum-exp over T ----------
    sim_t = cross * (inv1 * inv2) * inv_temp                                # (N, C)
    e_t = jnp.exp(sim_t - shift)                                            # <= ~1, no overflow
    l_ref[...] = l_ref[...] + jnp.sum(e_t.reshape(tT, B, C), axis=0)        # (B, C) vector adds
    sim_ref[...] = sim_ref[...] + jnp.sum(sim_t.reshape(tT, B, C), axis=0)

    # ---- instance loss: grouped (gB, F) x (F, gB) MXU matmuls + masked shift-LSE --------------
    if B > 1:
        inv_bc = jnp.concatenate([inv1, inv2], axis=0)                      # (2N, C)
        inv_f = jnp.dot(inv_bc, segT_ref[...],
                        preferred_element_type=jnp.float32)                 # (2N, F) expand C->D
        z1n = z1 * inv_f[0:N]                                               # (N, F) normalized
        z2n = z2 * inv_f[N:2 * N]
        z1g = z1n.reshape(K, gB, F).astype(mxu_dtype)
        z2g = z2n.reshape(K, gB, F).astype(mxu_dtype)
        sims = jnp.einsum('kif,kjf->kij', z1g, z2g,
                          preferred_element_type=jnp.float32) * inv_temp    # (K, gB, gB)
        m = mask_ref[...][None]                                             # (1, gB, gB) 0/1
        e_i = jnp.exp(sims - shift) * m                                     # masked, exps <= ~1
        row_l = jnp.sum(e_i, axis=-1, keepdims=True)                        # (K, gB, 1)
        row_s = jnp.sum(sims * m, axis=-1, keepdims=True)                   # (K, gB, 1)
        # sum_{j!=b} (lse - sim_j) = (B-1)*(shift + log(row_l)) - row_s, per row (t, b).
        contrib = jnp.float32(B - 1) * (jnp.log(row_l) + shift) - row_s
        inst_ref[...] = inst_ref[...] + jnp.sum(contrib, axis=0)            # (gB, 1)

    # ---- finalize: cross-lane reductions + the single scalar write, last grid step only -------
    @pl.when(ti == nt - 1)
    def _():
        lse_t = shift + jnp.log(l_ref[...])                                 # (B, C)
        t_sum = jnp.float32(total_t) * jnp.sum(lse_t) - jnp.sum(sim_ref[...])
        loss_t = t_sum / jnp.float32(B * C * total_t)
        if B > 1:
            loss_i = jnp.sum(inst_ref[...]) / jnp.float32(B * (B - 1) * total_t)
        else:
            loss_i = jnp.float32(0.0)                                       # no negatives if B == 1
        out_ref[0, 0] = jnp.float32(0.5) * (loss_t + loss_i)


def _vmem_budget_bytes():
    """Generation-aware VMEM budget (v7x has 64 MiB; v5e/v6e have 128 MiB)."""
    cap = 64 * 1024 * 1024
    try:
        info = pltpu.get_tpu_info()
        cap = int(getattr(info, "vmem_capacity_bytes", cap))
    except Exception:
        pass
    return int(min(cap * 3 // 4, 96 * 1024 * 1024))


def _pick_t_tile(T, B, F, max_block_f32_bytes, max_tile=1024):
    """Largest divisor of T whose f32 (tT, B, F) block stays under the per-block budget."""
    cap = int(max(1, min(max_tile, max_block_f32_bytes // max(1, B * F * 4))))
    if T <= cap:
        return T
    best = 1
    for tt in range(1, cap + 1):
        if T % tt == 0:
            best = tt
    return best
    # TODO(synk): pad + mask the tail tile instead (prime T currently degrades toward tT=1).


def _pick_group(tT, B, cap_rows=256):
    """Largest divisor g of tT with g*B <= cap_rows (MXU-friendly ~128-256 row groups)."""
    g = 1
    for cand in range(1, tT + 1):
        if tT % cand == 0 and cand * B <= cap_rows:
            g = cand
    return g


def ts2vec_loss_tbf(x1, x2, n_channels, temperature=0.5, t_tile=None, mxu_dtype=None):
    """TS2Vec loss on pre-transposed inputs of shape (T, B, C*D) (lane-dense feature axis)."""
    T, B, F = x1.shape
    C = int(n_channels)
    assert F % C == 0, "feature axis must be C*D"
    D = F // C

    if mxu_dtype is None:
        mxu_dtype = jnp.bfloat16 if x1.dtype == jnp.bfloat16 else jnp.float32
    mxu_dtype = jnp.dtype(mxu_dtype)

    vmem_limit = _vmem_budget_bytes()
    max_block = max(256 * 1024, min(4 * 1024 * 1024, vmem_limit // 20))
    if t_tile is None:
        tT = _pick_t_tile(T, B, F, max_block)
    else:
        tT = max(1, min(int(t_tile), T))
        while T % tT:
            tT -= 1
    g = _pick_group(tT, B)
    gB = g * B
    grid = (T // tT,)

    # Loop-invariant constants, built once host-side; the constant index_map means the
    # pipeline does not re-copy these blocks across grid steps.
    ch = np.arange(F) // D                                                  # channel of each lane
    seg_np = (ch[:, None] == np.arange(C)[None, :]).astype(np.float32)      # (F, C)
    r = np.arange(gB)
    mask_np = (((r[:, None] // B) == (r[None, :] // B)) &
               (r[:, None] != r[None, :])).astype(np.float32)               # (gB, gB)
    seg = jnp.asarray(seg_np, dtype=mxu_dtype)
    segT = jnp.asarray(seg_np.T, dtype=jnp.float32)
    mask_f = jnp.asarray(mask_np, dtype=jnp.float32)

    kernel = functools.partial(
        _ts2vec_loss_kernel,
        temperature=float(temperature), total_t=int(T), mxu_dtype=mxu_dtype)

    out = pl.pallas_call(
        kernel,
        out_shape=jax.ShapeDtypeStruct((1, 1), jnp.float32),
        grid=grid,
        in_specs=[
            pl.BlockSpec((tT, B, F), lambda i: (i, 0, 0)),
            pl.BlockSpec((tT, B, F), lambda i: (i, 0, 0)),
            pl.BlockSpec((F, C), lambda i: (0, 0)),
            pl.BlockSpec((C, F), lambda i: (0, 0)),
            pl.BlockSpec((gB, gB), lambda i: (0, 0)),
        ],
        out_specs=pl.BlockSpec(memory_space=pltpu.MemorySpace.SMEM),
        scratch_shapes=[
            pltpu.VMEM((B, C), jnp.float32),     # running sum_t exp(sim_t - shift)
            pltpu.VMEM((B, C), jnp.float32),     # running sum_t sim_t
            pltpu.VMEM((gB, 1), jnp.float32),    # running per-row instance partials
        ],
        compiler_params=pltpu.CompilerParams(
            dimension_semantics=("arbitrary",),  # sequential accumulation across T tiles
            vmem_limit_bytes=vmem_limit,
        ),
    )(x1, x2, seg, segT, mask_f)
    return out[0, 0]


def ts2vec_loss(z_t1, z_t2, temperature=0.5, t_tile=None, mxu_dtype=None):
    """z_t1, z_t2: (B, C, D, T), identical to the PyTorch module's inputs. Returns a scalar."""
    B, C, D, T = z_t1.shape
    # TODO(synk): have the producer emit (T, B, C*D) directly (call ts2vec_loss_tbf) so this
    #             HBM round-trip transpose disappears; kept here only to match the module API.
    x1 = jnp.transpose(z_t1, (3, 0, 1, 2)).reshape(T, B, C * D)
    x2 = jnp.transpose(z_t2, (3, 0, 1, 2)).reshape(T, B, C * D)
    return ts2vec_loss_tbf(x1, x2, C, temperature=temperature, t_tile=t_tile,
                           mxu_dtype=mxu_dtype)


def _reference(z1, z2, temperature=0.5):
    """Pure-JAX mirror of the PyTorch forward, for correctness checking."""
    B, C, D, T = z1.shape
    eps = 1e-12
    z1 = z1 / jnp.maximum(jnp.sqrt(jnp.sum(z1 * z1, axis=2, keepdims=True)), eps)
    z2 = z2 / jnp.maximum(jnp.sqrt(jnp.sum(z2 * z2, axis=2, keepdims=True)), eps)
    sim_t = jnp.einsum('bcdt,bcdt->bct', z1, z2) / temperature
    loss_t = jnp.mean(jax.nn.logsumexp(sim_t, axis=-1, keepdims=True) - sim_t)
    z1f = jnp.transpose(z1, (0, 3, 1, 2)).reshape(B, T, C * D)
    z2f = jnp.transpose(z2, (0, 3, 1, 2)).reshape(B, T, C * D)
    sim_i = jnp.einsum('btd,jtd->btj', z1f, z2f) / temperature
    mask = jnp.broadcast_to(~jnp.eye(B, dtype=bool)[:, None, :], sim_i.shape)
    sim_m = jnp.where(mask, sim_i, -1e30)
    lse = jax.nn.logsumexp(sim_m, axis=-1, keepdims=True)
    loss_i = jnp.sum(jnp.where(mask, lse - sim_i, 0.0)) / (B * (B - 1) * T)
    return (loss_t + loss_i) / 2


if __name__ == "__main__":
    key = jax.random.PRNGKey(0)
    k1, k2 = jax.random.split(key)
    B, C, D, T = 8, 4, 16, 16
    z_t1 = jax.random.normal(k1, (B, C, D, T), dtype=jnp.float32)
    z_t2 = jax.random.normal(k2, (B, C, D, T), dtype=jnp.float32)

    ref = _reference(z_t1, z_t2, temperature=0.5)

    # 1) f32 MXU path; t_tile=8 -> grid of 2 T-tiles (exercises init / accumulate / finalize).
    loss = jax.block_until_ready(ts2vec_loss(z_t1, z_t2, temperature=0.5, t_tile=8))
    assert jnp.isfinite(loss), "kernel produced a non-finite loss"
    assert abs(float(loss) - float(ref)) < 5e-4, (float(loss), float(ref))

    # 2) bf16 MXU-operand path (v5e/v6e feedback), default (single) tile.
    loss_bf16 = jax.block_until_ready(
        ts2vec_loss(z_t1, z_t2, temperature=0.5, mxu_dtype=jnp.bfloat16))
    assert jnp.isfinite(loss_bf16), "bf16-MXU kernel produced a non-finite loss"
    assert abs(float(loss_bf16) - float(ref)) < 3e-2, (float(loss_bf16), float(ref))

    print("KERNEL_OK")
</pallas_src>

<mosaic_0001>
module attributes {stable_mosaic.version = 11 : i64} {
  func.func @_ts2vec_loss_kernel(%arg0: i32, %arg1: memref<8x8x64xf32, #tpu.memory_space<vmem>>, %arg2: memref<8x8x64xf32, #tpu.memory_space<vmem>>, %arg3: memref<64x4xf32, #tpu.memory_space<vmem>>, %arg4: memref<4x64xf32, #tpu.memory_space<vmem>>, %arg5: memref<64x64xf32, #tpu.memory_space<vmem>>, %arg6: memref<1x1xf32, #tpu.memory_space<smem>>, %arg7: memref<8x4xf32, #tpu.memory_space<vmem>>, %arg8: memref<8x4xf32, #tpu.memory_space<vmem>>, %arg9: memref<64x1xf32, #tpu.memory_space<vmem>>) attributes {dimension_semantics = [#tpu.dimension_semantics<arbitrary>], iteration_bounds = array<i64: 2>, scalar_prefetch = 0 : i64, scratch_operands = 3 : i64, tpu.core_type = #tpu.core_type<tc>, window_params = [{transform_indices = @transform_0, window_bounds = array<i64: 8, 8, 64>}, {transform_indices = @transform_1, window_bounds = array<i64: 8, 8, 64>}, {pipeline_mode = #tpu.pipeline_mode<synchronous>, transform_indices = @transform_2, window_bounds = array<i64: 64, 4>}, {pipeline_mode = #tpu.pipeline_mode<synchronous>, transform_indices = @transform_3, window_bounds = array<i64: 4, 64>}, {pipeline_mode = #tpu.pipeline_mode<synchronous>, transform_indices = @transform_4, window_bounds = array<i64: 64, 64>}, {transform_indices = @transform_5, window_bounds = array<i64: 1, 1>}]} {
    %c0_i32 = arith.constant 0 : i32
    %0 = arith.cmpi eq, %arg0, %c0_i32 : i32
    %1 = arith.extui %0 : i1 to i32
    %c0_i32_0 = arith.constant 0 : i32
    %2 = arith.cmpi ne, %1, %c0_i32_0 : i32
    scf.if %2 {
      %cst_41 = arith.constant 0.000000e+00 : f32
      %75 = vector.broadcast %cst_41 : f32 to vector<8x4xf32>
      %c0_42 = arith.constant 0 : index
      %c0_43 = arith.constant 0 : index
      %76 = vector.load %arg7[%c0_42, %c0_43] : memref<8x4xf32, #tpu.memory_space<vmem>>, vector<8x4xf32>
      tpu.vector_store %arg7[%c0_42, %c0_43], %75 {strides = array<i32>} : memref<8x4xf32, #tpu.memory_space<vmem>>, vector<8x4xf32>,
      %cst_44 = arith.constant 0.000000e+00 : f32
      %77 = vector.broadcast %cst_44 : f32 to vector<8x4xf32>
      %c0_45 = arith.constant 0 : index
      %c0_46 = arith.constant 0 : index
      %78 = vector.load %arg8[%c0_45, %c0_46] : memref<8x4xf32, #tpu.memory_space<vmem>>, vector<8x4xf32>
      tpu.vector_store %arg8[%c0_45, %c0_46], %77 {strides = array<i32>} : memref<8x4xf32, #tpu.memory_space<vmem>>, vector<8x4xf32>,
      %cst_47 = arith.constant 0.000000e+00 : f32
      %79 = vector.broadcast %cst_47 : f32 to vector<64x1xf32>
      %c0_48 = arith.constant 0 : index
      %c0_49 = arith.constant 0 : index
      %80 = vector.load %arg9[%c0_48, %c0_49] : memref<64x1xf32, #tpu.memory_space<vmem>>, vector<64x1xf32>
      tpu.vector_store %arg9[%c0_48, %c0_49], %79 {strides = array<i32>} : memref<64x1xf32, #tpu.memory_space<vmem>>, vector<64x1xf32>,
    } else {
    }
    %c0 = arith.constant 0 : index
    %c0_1 = arith.constant 0 : index
    %c0_2 = arith.constant 0 : index
    %3 = vector.load %arg1[%c0, %c0_1, %c0_2] : memref<8x8x64xf32, #tpu.memory_space<vmem>>, vector<8x8x64xf32>
    %4 = vector.shape_cast %3 : vector<8x8x64xf32> to vector<64x64xf32>
    %c0_3 = arith.constant 0 : index
    %c0_4 = arith.constant 0 : index
    %c0_5 = arith.constant 0 : index
    %5 = vector.load %arg2[%c0_3, %c0_4, %c0_5] : memref<8x8x64xf32, #tpu.memory_space<vmem>>, vector<8x8x64xf32>
    %6 = vector.shape_cast %5 : vector<8x8x64xf32> to vector<64x64xf32>
    %7 = arith.mulf %4, %4 : vector<64x64xf32>
    %8 = arith.mulf %6, %6 : vector<64x64xf32>
    %9 = arith.mulf %4, %6 : vector<64x64xf32>
    %10 = tpu.concatenate %7, %8, %9 in 0 : vector<64x64xf32>, vector<64x64xf32>, vector<64x64xf32> -> vector<192x64xf32>
    %c0_6 = arith.constant 0 : index
    %c0_7 = arith.constant 0 : index
    %11 = vector.load %arg3[%c0_6, %c0_7] : memref<64x4xf32, #tpu.memory_space<vmem>>, vector<64x4xf32>
    %cst = arith.constant dense<0.000000e+00> : vector<192x4xf32>
    %12 = tpu.matmul %10, %11, %cst {dimension_numbers = #tpu.dot_dimension_numbers<[1], [0], [0], [1], [0, 0, 1, 1], [], []>} : vector<192x64xf32>, vector<64x4xf32>, vector<192x4xf32> -> vector<192x4xf32>
    %13 = vector.extract_strided_slice %12 {offsets = [0, 0], sizes = [64, 4], strides = [1, 1]} : vector<192x4xf32> to vector<64x4xf32>
    %14 = vector.extract_strided_slice %12 {offsets = [64, 0], sizes = [64, 4], strides = [1, 1]} : vector<192x4xf32> to vector<64x4xf32>
    %15 = vector.extract_strided_slice %12 {offsets = [128, 0], sizes = [64, 4], strides = [1, 1]} : vector<192x4xf32> to vector<64x4xf32>
    %cst_8 = arith.constant 1.000000e-24 : f32
    %16 = vector.broadcast %cst_8 : f32 to vector<64x4xf32>
    %17 = arith.maximumf %13, %16 : vector<64x4xf32>
    %18 = math.rsqrt %17 : vector<64x4xf32>
    %cst_9 = arith.constant 1.000000e-24 : f32
    %19 = vector.broadcast %cst_9 : f32 to vector<64x4xf32>
    %20 = arith.maximumf %14, %19 : vector<64x4xf32>
    %21 = math.rsqrt %20 : vector<64x4xf32>
    %22 = arith.mulf %18, %21 : vector<64x4xf32>
    %23 = arith.mulf %15, %22 : vector<64x4xf32>
    %cst_10 = arith.constant 2.000000e+00 : f32
    %24 = vector.broadcast %cst_10 : f32 to vector<64x4xf32>
    %25 = arith.mulf %23, %24 : vector<64x4xf32>
    %cst_11 = arith.constant 2.000000e+00 : f32
    %26 = vector.broadcast %cst_11 : f32 to vector<64x4xf32>
    %27 = arith.subf %25, %26 : vector<64x4xf32>
    %28 = math.exp %27 : vector<64x4xf32>
    %c0_12 = arith.constant 0 : index
    %c0_13 = arith.constant 0 : index
    %29 = vector.load %arg7[%c0_12, %c0_13] : memref<8x4xf32, #tpu.memory_space<vmem>>, vector<8x4xf32>
    %30 = vector.shape_cast %28 : vector<64x4xf32> to vector<8x8x4xf32>
    %cst_14 = arith.constant dense<0.000000e+00> : vector<8x4xf32>
    %31 = vector.multi_reduction <add>, %30, %cst_14 [0] : vector<8x8x4xf32> to vector<8x4xf32>
    %32 = arith.addf %29, %31 : vector<8x4xf32>
    %c0_15 = arith.constant 0 : index
    %c0_16 = arith.constant 0 : index
    %33 = vector.load %arg7[%c0_15, %c0_16] : memref<8x4xf32, #tpu.memory_space<vmem>>, vector<8x4xf32>
    tpu.vector_store %arg7[%c0_15, %c0_16], %32 {strides = array<i32>} : memref<8x4xf32, #tpu.memory_space<vmem>>, vector<8x4xf32>,
    %c0_17 = arith.constant 0 : index
    %c0_18 = arith.constant 0 : index
    %34 = vector.load %arg8[%c0_17, %c0_18] : memref<8x4xf32, #tpu.memory_space<vmem>>, vector<8x4xf32>
    %35 = vector.shape_cast %25 : vector<64x4xf32> to vector<8x8x4xf32>
    %cst_19 = arith.constant dense<0.000000e+00> : vector<8x4xf32>
    %36 = vector.multi_reduction <add>, %35, %cst_19 [0] : vector<8x8x4xf32> to vector<8x4xf32>
    %37 = arith.addf %34, %36 : vector<8x4xf32>
    %c0_20 = arith.constant 0 : index
    %c0_21 = arith.constant 0 : index
    %38 = vector.load %arg8[%c0_20, %c0_21] : memref<8x4xf32, #tpu.memory_space<vmem>>, vector<8x4xf32>
    tpu.vector_store %arg8[%c0_20, %c0_21], %37 {strides = array<i32>} : memref<8x4xf32, #tpu.memory_space<vmem>>, vector<8x4xf32>,
    %39 = tpu.concatenate %18, %21 in 0 : vector<64x4xf32>, vector<64x4xf32> -> vector<128x4xf32>
    %c0_22 = arith.constant 0 : index
    %c0_23 = arith.constant 0 : index
    %40 = vector.load %arg4[%c0_22, %c0_23] : memref<4x64xf32, #tpu.memory_space<vmem>>, vector<4x64xf32>
    %cst_24 = arith.constant dense<0.000000e+00> : vector<128x64xf32>
    %41 = tpu.matmul %39, %40, %cst_24 {dimension_numbers = #tpu.dot_dimension_numbers<[1], [0], [0], [1], [0, 0, 1, 1], [], []>} : vector<128x4xf32>, vector<4x64xf32>, vector<128x64xf32> -> vector<128x64xf32>
    %42 = vector.extract_strided_slice %41 {offsets = [0, 0], sizes = [64, 64], strides = [1, 1]} : vector<128x64xf32> to vector<64x64xf32>
    %43 = arith.mulf %4, %42 : vector<64x64xf32>
    %44 = vector.extract_strided_slice %41 {offsets = [64, 0], sizes = [64, 64], strides = [1, 1]} : vector<128x64xf32> to vector<64x64xf32>
    %45 = arith.mulf %6, %44 : vector<64x64xf32>
    %46 = vector.shape_cast %43 : vector<64x64xf32> to vector<1x64x64xf32>
    %47 = vector.shape_cast %45 : vector<64x64xf32> to vector<1x64x64xf32>
    "tpu.trace_start"() <{level = 10 : i32, message = "kif,kjf->kij"}> : () -> ()
    %cst_25 = arith.constant dense<0.000000e+00> : vector<1x64x64xf32>
    %48 = tpu.matmul %46, %47, %cst_25 {dimension_numbers = #tpu.dot_dimension_numbers<[2], [2], [1], [1], [0, 0, 0, 1, 1, 1], [0], [0]>} : vector<1x64x64xf32>, vector<1x64x64xf32>, vector<1x64x64xf32> -> vector<1x64x64xf32>
    "tpu.trace_stop"() : () -> ()
    %cst_26 = arith.constant 2.000000e+00 : f32
    %49 = vector.broadcast %cst_26 : f32 to vector<1x64x64xf32>
    %50 = arith.mulf %48, %49 : vector<1x64x64xf32>
    %c0_27 = arith.constant 0 : index
    %c0_28 = arith.constant 0 : index
    %51 = vector.load %arg5[%c0_27, %c0_28] : memref<64x64xf32, #tpu.memory_space<vmem>>, vector<64x64xf32>
    %52 = vector.shape_cast %51 : vector<64x64xf32> to vector<1x64x64xf32>
    %cst_29 = arith.constant 2.000000e+00 : f32
    %53 = vector.broadcast %cst_29 : f32 to vector<1x64x64xf32>
    %54 = arith.subf %50, %53 : vector<1x64x64xf32>
    %55 = math.exp %54 : vector<1x64x64xf32>
    %56 = arith.mulf %55, %52 : vector<1x64x64xf32>
    %cst_30 = arith.constant dense<0.000000e+00> : vector<1x64xf32>
    %57 = vector.multi_reduction <add>, %56, %cst_30 [2] : vector<1x64x64xf32> to vector<1x64xf32>
    %58 = vector.shape_cast %57 : vector<1x64xf32> to vector<1x64x1xf32>
    %59 = arith.mulf %50, %52 : vector<1x64x64xf32>
    %cst_31 = arith.constant dense<0.000000e+00> : vector<1x64xf32>
    %60 = vector.multi_reduction <add>, %59, %cst_31 [2] : vector<1x64x64xf32> to vector<1x64xf32>
    %61 = vector.shape_cast %60 : vector<1x64xf32> to vector<1x64x1xf32>
    %62 = math.log %58 : vector<1x64x1xf32>
    %cst_32 = arith.constant 2.000000e+00 : f32
    %63 = vector.broadcast %cst_32 : f32 to vector<1x64x1xf32>
    %64 = arith.addf %62, %63 : vector<1x64x1xf32>
    %cst_33 = arith.constant 7.000000e+00 : f32
    %65 = vector.broadcast %cst_33 : f32 to vector<1x64x1xf32>
    %66 = arith.mulf %65, %64 : vector<1x64x1xf32>
    %67 = arith.subf %66, %61 : vector<1x64x1xf32>
    %c0_34 = arith.constant 0 : index
    %c0_35 = arith.constant 0 : index
    %68 = vector.load %arg9[%c0_34, %c0_35] : memref<64x1xf32, #tpu.memory_space<vmem>>, vector<64x1xf32>
    %cst_36 = arith.constant dense<0.000000e+00> : vector<64x1xf32>
    %69 = vector.multi_reduction <add>, %67, %cst_36 [0] : vector<1x64x1xf32> to vector<64x1xf32>
    %70 = arith.addf %68, %69 : vector<64x1xf32>
    %c0_37 = arith.constant 0 : index
    %c0_38 = arith.constant 0 : index
    %71 = vector.load %arg9[%c0_37, %c0_38] : memref<64x1xf32, #tpu.memory_space<vmem>>, vector<64x1xf32>
    tpu.vector_store %arg9[%c0_37, %c0_38], %70 {strides = array<i32>} : memref<64x1xf32, #tpu.memory_space<vmem>>, vector<64x1xf32>,
    %c1_i32 = arith.constant 1 : i32
    %72 = arith.cmpi eq, %arg0, %c1_i32 : i32
    %73 = arith.extui %72 : i1 to i32
    %cst_39 = arith.constant 2.000000e+00 : f32
    %c0_i32_40 = arith.constant 0 : i32
    %74 = arith.cmpi ne, %73, %c0_i32_40 : i32
    scf.if %74 {
      %c0_41 = arith.constant 0 : index
      %c0_42 = arith.constant 0 : index
      %75 = vector.load %arg7[%c0_41, %c0_42] : memref<8x4xf32, #tpu.memory_space<vmem>>, vector<8x4xf32>
      %76 = math.log %75 : vector<8x4xf32>
      %77 = vector.broadcast %cst_39 : f32 to vector<8x4xf32>
      %78 = arith.addf %77, %76 : vector<8x4xf32>
      %79 = vector.shape_cast %78 : vector<8x4xf32> to vector<1x8x4xf32>
      %cst_43 = arith.constant dense<0.000000e+00> : vector<1xf32>
      %80 = vector.multi_reduction <add>, %79, %cst_43 [1, 2] : vector<1x8x4xf32> to vector<1xf32>
      %81 = vector.shape_cast %80 : vector<1xf32> to vector<1x1x1xf32>
      %82 = vector.extract %81[0, 0, 0] : f32 from vector<1x1x1xf32>
      %cst_44 = arith.constant 1.600000e+01 : f32
      %83 = arith.mulf %cst_44, %82 : f32
      %c0_45 = arith.constant 0 : index
      %c0_46 = arith.constant 0 : index
      %84 = vector.load %arg8[%c0_45, %c0_46] : memref<8x4xf32, #tpu.memory_space<vmem>>, vector<8x4xf32>
      %85 = vector.shape_cast %84 : vector<8x4xf32> to vector<1x8x4xf32>
      %cst_47 = arith.constant dense<0.000000e+00> : vector<1xf32>
      %86 = vector.multi_reduction <add>, %85, %cst_47 [1, 2] : vector<1x8x4xf32> to vector<1xf32>
      %87 = vector.shape_cast %86 : vector<1xf32> to vector<1x1x1xf32>
      %88 = vector.extract %87[0, 0, 0] : f32 from vector<1x1x1xf32>
      %89 = arith.subf %83, %88 : f32
      %cst_48 = arith.constant 5.120000e+02 : f32
      %90 = arith.divf %89, %cst_48 : f32
      %c0_49 = arith.constant 0 : index
      %c0_50 = arith.constant 0 : index
      %91 = vector.load %arg9[%c0_49, %c0_50] : memref<64x1xf32, #tpu.memory_space<vmem>>, vector<64x1xf32>
      %92 = vector.shape_cast %91 : vector<64x1xf32> to vector<1x64x1xf32>
      %cst_51 = arith.constant dense<0.000000e+00> : vector<1xf32>
      %93 = vector.multi_reduction <add>, %92, %cst_51 [1, 2] : vector<1x64x1xf32> to vector<1xf32>
      %94 = vector.shape_cast %93 : vector<1xf32> to vector<1x1x1xf32>
      %95 = vector.extract %94[0, 0, 0] : f32 from vector<1x1x1xf32>
      %cst_52 = arith.constant 8.960000e+02 : f32
      %96 = arith.divf %95, %cst_52 : f32
      %97 = arith.addf %90, %96 : f32
      %cst_53 = arith.constant 5.000000e-01 : f32
      %98 = arith.mulf %cst_53, %97 : f32
      %c0_54 = arith.constant 0 : index
      %c0_55 = arith.constant 0 : index
      %99 = memref.load %arg6[%c0_54, %c0_55] : memref<1x1xf32, #tpu.memory_space<smem>>
      memref.store %98, %arg6[%c0_54, %c0_55] : memref<1x1xf32, #tpu.memory_space<smem>>
    } else {
    }
    return
  }
  func.func @transform_0(%arg0: i32) -> (i32, i32, i32) {
    %c0_i32 = arith.constant 0 : i32
    %c0_i32_0 = arith.constant 0 : i32
    %c0_i32_1 = arith.constant 0 : i32
    return %arg0, %c0_i32, %c0_i32_0 : i32, i32, i32
  }
  func.func @transform_1(%arg0: i32) -> (i32, i32, i32) {
    %c0_i32 = arith.constant 0 : i32
    %c0_i32_0 = arith.constant 0 : i32
    %c0_i32_1 = arith.constant 0 : i32
    return %arg0, %c0_i32, %c0_i32_0 : i32, i32, i32
  }
  func.func @transform_2(%arg0: i32) -> (i32, i32) {
    %c0_i32 = arith.constant 0 : i32
    %c0_i32_0 = arith.constant 0 : i32
    %c0_i32_1 = arith.constant 0 : i32
    return %c0_i32, %c0_i32_0 : i32, i32
  }
  func.func @transform_3(%arg0: i32) -> (i32, i32) {
    %c0_i32 = arith.constant 0 : i32
    %c0_i32_0 = arith.constant 0 : i32
    %c0_i32_1 = arith.constant 0 : i32
    return %c0_i32, %c0_i32_0 : i32, i32
  }
  func.func @transform_4(%arg0: i32) -> (i32, i32) {
    %c0_i32 = arith.constant 0 : i32
    %c0_i32_0 = arith.constant 0 : i32
    %c0_i32_1 = arith.constant 0 : i32
    return %c0_i32, %c0_i32_0 : i32, i32
  }
  func.func @transform_5(%arg0: i32) -> (i32, i32) {
    %c0_i32 = arith.constant 0 : i32
    %c0_i32_0 = arith.constant 0 : i32
    %c0_i32_1 = arith.constant 0 : i32
    return %c0_i32, %c0_i32_0 : i32, i32
  }
}

</mosaic_0001>

<bundles_post_ra>
// kernel: tpu_custom_call.1
= control target key start
LH: loop header
LB: loop body
LE: loop exit
PB: predicated region body
PF: predicated region fallthrough
CT: control target
= control target key end

     0   :  { %10 = vsyncpa [#allocation6], 0  ;;  %s2505_s0 = inlined_call_operand.hbm [shape: f32[16,8,64], index: 0, kind: input, shape index: {}]   ;;  %s2506_s1 = inlined_call_operand.hbm [shape: f32[16,8,64], index: 1, kind: input, shape index: {}]   ;;  %s2507_s2 = inlined_call_operand.vmem [shape: f32[64,4], index: 2, kind: input, shape index: {}]   ;;  %s2508_s3 = inlined_call_operand.vmem [shape: f32[4,64], index: 3, kind: input, shape index: {}]   ;;  %s2509_s4 = inlined_call_operand.vmem [shape: f32[64,64], index: 4, kind: input, shape index: {}]   ;;  %s2510_s5 = inlined_call_operand.hbm [shape: f32[1,1], index: 5, kind: output, shape index: {}]  }
   0x1   :  { %12 = vsyncpa [#allocation6 + $0x1], 0 }
   0x2   :  { %13 = vsyncpa [#allocation9], 0 }
   0x3   :  { %15 = vsyncpa [#allocation9 + $0x1], 0 }
   0x4   :  { %16 = vsyncpa [#allocation7], 0  ;;  %s2006_s18 = smov 0   ;;  %s2008_s19 = smov 0  }
   0x5   :  { %s2010_s20 = smov 0   ;;  %s2012_s21 = smov 0  }
   0x6 LB: > { %s2025_s22 = sadd.s32 4294967295, %s1968_s21   ;;  %s2028_s23 = sadd.s32 1, %s1968_s21   ;;  %s1968_s21 = sphi %s2012_s21, %s2522_s21   ;;  %s1964_s20 = sphi %s2010_s20, %s2521_s20   ;;  %s1960_s19 = sphi %s2008_s19, %s2520_s19   ;;  %s1956_s18 = sphi %s2006_s18, %s2519_s18  }
   0x7   : > { %s26_s24 = ssub.s32 %s1968_s21, %s2028_s23  ;;  %s29_s25 = sadd.s32 1, %s1964_s20 }
   0x8   : > { %p27_p0 = scmp.eq.s32.totalorder %s26_s24, 0  ;;  %p36_p1 = scmp.ne.s32.totalorder %s1964_s20, %s1960_s19 }
   0x9   : > { %p37_p2 = scmp.eq.s32.totalorder %s1968_s21, 0  ;;  %p42_p3 = scmp.ne.s32.totalorder %s1960_s19, %s1956_s18 }
   0xa   : > { %s2038_s26 = scalar_select %p27_p0, %s1964_s20, %s29_s25  }
   0xb   : > { %p38_p4 = por %p37_p2, %p36_p1  ;;  %p43_p5 = scmp.eq.s32.totalorder %s2025_s22, 0 }
   0xc   : > { %p1733_p6 = scmp.lt.s32.totalorder %s1968_s21, 2  ;;  %s2047_s28 = sand.u32 1, %s1964_s20  }
   0xd   : > { %p2042_p7 = por %p43_p5, %p42_p3  ;;  %s1411_s29 = sshll.u32 %s2047_s28, 6 }
   0xe   : > { %s1499_s30 = sshll.u32 %s1968_s21, 10  ;;  %s189_s9 = scalar_lea.vmem [#allocation5], %s1411_s29 }
   0xf   : > { %s2512_s27 = scalar_select %p2042_p7, 1, 0 }
  0x10   : > { %s2056_s8 = scalar_lea.hbm %s2505_s0, %s1499_s30  ;;  %s196_s10 = sshll.u32 %s189_s9, 4  ;;  %s2060_s10 = int_to_ptr.vmem [resolvable:$true] %s196_s10 }
  0x11   : > { %p2062_p8 = pnand %p1733_p6, %p38_p4  ;;  %s186_s12 = scalar_lea.sflag [#allocation6], %s2047_s28 }
  0x12   : > { %s1854_s13 = scalar_lea.hbm %s2056_s8, 1024  ;;  %s1859_s16 = scalar_lea.hbm %s2505_s0, 2048 }
  0x13   : > { %p1855_p10 = scmp.ne.s32.totalorder %s2056_s8, %s1854_s13  ;;  %p1856_p11 = pneg %p2062_p8 }
  0x14   : > { %p1860_p0 = scmp.lt.u32.totalorder %s2056_s8, %s2505_s0  ;;  %p1861_p1 = scmp.lt.u32.totalorder %s1859_s16, %s1854_s13 }
  0x15   : > { %p1857_p12 = pnand %p1856_p11, %p1855_p10  ;;  %p1863_p3 = scmp.lt.u32.totalorder %s1854_s13, %s2056_s8 }
  0x16   : > { %p1862_p2 = por %p1861_p1, %p1860_p0 }
  0x17   : > { %p1858_p13 = pneg %p1857_p12 }
  0x18   : > { %p1864_p4 = por %p1863_p3, %p1862_p2 }
  0x1a   : > { %p1865_p5 = pnand %p1864_p4, %p1858_p13 }
  0x1c   : > { %1868 = shalt.err (!%p1865_p5)
}
  0x1d   : > { %s1869_s24 = scalar_lea.vmem %s2060_s10, 1024  ;;  %s1970_s25 = smov [#allocation5]  }
  0x1e   : > { %p1870_p6 = scmp.ne.s32.totalorder %s2060_s10, %s1869_s24  ;;  %s1874_s6 = sshll.u32 %s1970_s25, 4  ;;  %s1875_s6 = int_to_ptr.vmem [resolvable:$false] %s1874_s6 }
  0x1f   : > { %s1876_s7 = scalar_lea.vmem %s1875_s6, 2048  ;;  %p1877_p9 = scmp.lt.s32.totalorder %s2060_s10, %s1875_s6 }
  0x20   : > { %p1872_p10 = pnand %p1870_p6, %p1856_p11  ;;  %p1878_p0 = scmp.lt.s32.totalorder %s1876_s7, %s1869_s24 }
  0x22   : > { %p1873_p12 = pneg %p1872_p10  ;;  %p1879_p1 = por %p1878_p0, %p1877_p9 }
  0x24   : > { %p1880_p2 = pnand %p1879_p1, %p1873_p12 }
  0x26   : > { %1883 = shalt.err (!%p1880_p2)
}
  0x27   : > { %s1971_s9 = smov 128   ;;  %s1972_s13 = smov 8  }
  0x28   : > { %1729 = dma.hbm_to_vmem [thread:$0]  (!%p2062_p8), %s2056_s8, 1024, %s2060_s10, %s186_s12, %s1971_s9, %s1971_s9, %s1972_s13  }
  0x29   : > { %p225_p9 = scmp.lt.s32.totalorder %s1968_s21, 3  ;;  %s2104_s16 = scalar_lea.hbm %s2506_s1, %s1499_s30 }
  0x2a   : > { %p2514_p13 = scmp.ge.s32.totalorder %s1968_s21, 1  ;;  %s210_s18 = scalar_lea.vmem [#allocation8], %s1411_s29 }
  0x2b   : > { %s217_s24 = sshll.u32 %s210_s18, 4  ;;  %s207_s8 = scalar_lea.sflag [#allocation9], %s2047_s28  ;;  %s2114_s24 = int_to_ptr.vmem [resolvable:$true] %s217_s24 }
  0x2c   : > { %p2108_p3 = pnand %p2514_p13, %p225_p9  ;;  %s1884_s10 = scalar_lea.hbm %s2104_s16, 1024 }
  0x2d   : > { %p1885_p4 = scmp.ne.s32.totalorder %s2104_s16, %s1884_s10  ;;  %s1889_s12 = scalar_lea.hbm %s2506_s1, 2048 }
  0x2e   : > { %p1890_p10 = scmp.lt.u32.totalorder %s2104_s16, %s2506_s1  ;;  %p1891_p12 = scmp.lt.u32.totalorder %s1889_s12, %s1884_s10 }
  0x2f   : > { %p1887_p5 = pnand %p1885_p4, %p1856_p11  ;;  %p1893_p1 = scmp.lt.u32.totalorder %s1884_s10, %s2104_s16 }
  0x30   : > { %p1892_p0 = por %p1891_p12, %p1890_p10 }
  0x31   : > { %p1888_p6 = pneg %p1887_p5 }
  0x32   : > { %p1894_p2 = por %p1893_p1, %p1892_p0 }
  0x34   : > { %p1895_p9 = pnand %p1894_p2, %p1888_p6 }
  0x36   : > { %1898 = shalt.err (!%p1895_p9)
}
  0x37   : > { %s1899_s29 = scalar_lea.vmem %s2114_s24, 1024  ;;  %s1973_s7 = smov [#allocation8]  }
  0x38   : > { %p1900_p13 = scmp.ne.s32.totalorder %s2114_s24, %s1899_s29  ;;  %s1904_s14 = sshll.u32 %s1973_s7, 4  ;;  %s1905_s14 = int_to_ptr.vmem [resolvable:$false] %s1904_s14 }
  0x39   : > { %s1906_s15 = scalar_lea.vmem %s1905_s14, 2048  ;;  %p1907_p7 = scmp.lt.s32.totalorder %s2114_s24, %s1905_s14 }
  0x3a   : > { %p1902_p4 = pnand %p1900_p13, %p1856_p11  ;;  %p1908_p10 = scmp.lt.s32.totalorder %s1906_s15, %s1899_s29 }
  0x3c   : > { %p1903_p5 = pneg %p1902_p4  ;;  %p1909_p12 = por %p1908_p10, %p1907_p7 }
  0x3e   : > { %p1910_p0 = pnand %p1909_p12, %p1903_p5 }
  0x40   : > { %1913 = shalt.err (!%p1910_p0)
}
  0x41   : > { %1732 = dma.hbm_to_vmem [thread:$0]  (!%p2062_p8), %s2104_s16, 1024, %s2114_s24, %s207_s8, %s1971_s9, %s1971_s9, %s1972_s13  }
  0x42   : > { %229 = sbr.rel (%p2108_p3) target bundleno = 1246 (0x4de), region = 40  ;;  %s231_s18 = sand.u32 (!%p2108_p3), 1, %s1960_s19  }
  0x43   : > { %s1418_s10 = sshll.u32 (!%p2108_p3), %s231_s18, 6  ;;  %s232_s21 = scalar_lea.sflag (!%p2108_p3), [#allocation6], %s231_s18 }
  0x44   : > { %s2148_s30 = scalar_lea.vmem (!%p2108_p3), [#allocation5], %s1418_s10  ;;  %p2516_p7 = scmp.ne.s32.totalorder (!%p2108_p3), %s2512_s27, 0 }
  0x49   : > { %1943 = dma.done.wait (%p2516_p7), %s232_s21, 1024  }
  0x4a   : > { %1945 = vsyncadd (%p2516_p7), %s232_s21, 4294966272  ;;  %s241_s28 = scalar_lea.sflag [#allocation9], %s231_s18  ;;  %s2154_s11 = scalar_lea.vmem [#allocation8], %s1418_s10 }
  0x4b   : > { %1947 = dma.done.wait (%p2516_p7), %s241_s28, 1024  }
  0x4c   : > { %1949 = vsyncadd (%p2516_p7), %s241_s28, 4294966272  ;;  %p1420_p8 = scmp.ne.s32.totalorder %s2025_s22, 0 }
  0x4d   : > { %vm277_vm0 = vcmask (!%p1420_p8), 31744   ;;  %vm280_vm1 = vcmask (!%p1420_p8), 7168   ;;  %v1974_v0 = vmov (!%p1420_p8), 0.0  }
  0x4e   : > { %276 = sbr.rel (%p1420_p8) target bundleno = 85 (0x55), region = 52  ;;  %278 = vst.msk [vmem:[#allocation2] sm:$0xff] (!%p1420_p8), %vm277_vm0, %v1974_v0  ;;  %279 = vst.msk [vmem:[#allocation3] sm:$0xff] (!%p1420_p8), %vm277_vm0, %v1974_v0 }
  0x4f   : > { %281 = vst.msk [vmem:[#allocation4] sm:$0xff] (!%p1420_p8), %vm280_vm1, %v1974_v0  ;;  %282 = vst.msk [vmem:[#allocation4 + $0x8] sm:$0xff] (!%p1420_p8), %vm280_vm1, %v1974_v0 }
  0x50   : > { %283 = vst.msk [vmem:[#allocation4 + $0x10] sm:$0xff] (!%p1420_p8), %vm280_vm1, %v1974_v0  ;;  %284 = vst.msk [vmem:[#allocation4 + $0x18] sm:$0xff] (!%p1420_p8), %vm280_vm1, %v1974_v0 }
  0x51   : > { %285 = vst.msk [vmem:[#allocation4 + $0x20] sm:$0xff] (!%p1420_p8), %vm280_vm1, %v1974_v0  ;;  %286 = vst.msk [vmem:[#allocation4 + $0x28] sm:$0xff] (!%p1420_p8), %vm280_vm1, %v1974_v0 }
  0x52   : > { %287 = vst.msk [vmem:[#allocation4 + $0x30] sm:$0xff] (!%p1420_p8), %vm280_vm1, %v1974_v0  ;;  %288 = vst.msk [vmem:[#allocation4 + $0x38] sm:$0xff] (!%p1420_p8), %vm280_vm1, %v1974_v0 }
  0x55 PF: > { %v329_v1 = vld [vmem:[%s2507_s2] sm:$0xff]  ;;  %v330_v2 = vld [vmem:[%s2507_s2 + $0x8] sm:$0xff]  ;;  %v331_v3 = vld [vmem:[%s2507_s2 + $0x10] sm:$0xff]  ;;  %vm337_vm2 = vcmask 523264   ;;  %vm761_vm3 = vcmask 1043456   ;;  %vm676_vm4 = vcmask 31744  }
  0x56   : > { %v1672_v4 = vpack.c.bf16 %v330_v2, %v329_v1  ;;  %v332_v5 = vld [vmem:[%s2507_s2 + $0x18] sm:$0xff]  ;;  %v333_v7 = vld [vmem:[%s2507_s2 + $0x20] sm:$0xff]  ;;  %v334_v8 = vld [vmem:[%s2507_s2 + $0x28] sm:$0xff]  ;;  %vm1247_vm6 = vcmask 7168   ;;  %p1494_p11 = scmp.ne.s32.totalorder %s2025_s22, 1 }
  0x57   : > { %v1676_v6 = vpack.c.bf16 %v332_v5, %v331_v3  ;;  %v2180_v9 = vld [vmem:[%s2148_s30] sm:$0xff]  ;;  %v1680_v11 = vpack.c.bf16 %v334_v8, %v333_v7  ;;  %v336_v13 = vld [vmem:[%s2507_s2 + $0x38] sm:$0xff]  ;;  %v2195_v16 = vld [vmem:[%s2148_s30 + $0x10] sm:$0xff] }
  0x58   : > { %1673 = vmatprep.subr.bf16.mxu0 %v1672_v4  ;;  %v305_v10 = vmul.f32 %v2180_v9, %v2180_v9  ;;  %v335_v12 = vld [vmem:[%s2507_s2 + $0x30] sm:$0xff]  ;;  %v2192_v15 = vld [vmem:[%s2148_s30 + $0x8] sm:$0xff]  ;;  %v307_v18 = vmul.f32 %v2195_v16, %v2195_v16  ;;  %v2202_v19 = vld [vmem:[%s2148_s30 + $0x18] sm:$0xff] }
  0x59   : > { %1675 = vmatpush3.bf16.msra.mxu0 %v1672_v4  ;;  %v1684_v14 = vpack.c.bf16 %v336_v13, %v335_v12  ;;  %v306_v17 = vmul.f32 %v2192_v15, %v2192_v15  ;;  %v2205_v20 = vld [vmem:[%s2148_s30 + $0x20] sm:$0xff]  ;;  %v308_v21 = vmul.f32 %v2202_v19, %v2202_v19  ;;  %v2214_v23 = vld [vmem:[%s2148_s30 + $0x28] sm:$0xff]  ;;  %v2217_v24 = vld [vmem:[%s2148_s30 + $0x30] sm:$0xff] }
  0x5a   : > { %1677 = vmatprep.subr.bf16.mxu0 %v1676_v6  ;;  %1582 = vmatprep.mubr.msk.f32.mxu0 %vm337_vm2, %v305_v10  ;;  %v309_v22 = vmul.f32 %v2205_v20, %v2205_v20  ;;  %v310_v25 = vmul.f32 %v2214_v23, %v2214_v23  ;;  %v311_v26 = vmul.f32 %v2217_v24, %v2217_v24  ;;  %v2226_v27 = vld [vmem:[%s2148_s30 + $0x38] sm:$0xff]  ;;  %v2229_v28 = vld [vmem:[%s2154_s11] sm:$0xff]  ;;  %v2238_v31 = vld [vmem:[%s2154_s11 + $0x8] sm:$0xff] }
  0x5b   : > { %v312_v29 = vmul.f32 %v2226_v27, %v2226_v27  ;;  %v313_v30 = vmul.f32 %v2229_v28, %v2229_v28  ;;  %v2241_v32 = vld [vmem:[%s2154_s11 + $0x10] sm:$0xff]  ;;  %v314_v33 = vmul.f32 %v2238_v31, %v2238_v31  ;;  %v2250_v35 = vld [vmem:[%s2154_s11 + $0x18] sm:$0xff]  ;;  %v2253_v36 = vld [vmem:[%s2154_s11 + $0x20] sm:$0xff]  ;;  %v321_v45 = vmul.f32 %v2229_v28, %v2180_v9 }
  0x5c   : > { %v315_v34 = vmul.f32 %v2241_v32, %v2241_v32  ;;  %v316_v37 = vmul.f32 %v2250_v35, %v2250_v35  ;;  %v317_v38 = vmul.f32 %v2253_v36, %v2253_v36  ;;  %v2262_v39 = vld [vmem:[%s2154_s11 + $0x28] sm:$0xff]  ;;  %v2265_v40 = vld [vmem:[%s2154_s11 + $0x30] sm:$0xff]  ;;  %v2274_v43 = vld [vmem:[%s2154_s11 + $0x38] sm:$0xff]  ;;  %v322_v46 = vmul.f32 %v2238_v31, %v2192_v15 }
  0x5d   : > { %1679 = vmatpush3.bf16.msra.mxu0 %v1676_v6  ;;  %v318_v41 = vmul.f32 %v2262_v39, %v2262_v39  ;;  %v319_v42 = vmul.f32 %v2265_v40, %v2265_v40  ;;  %v320_v44 = vmul.f32 %v2274_v43, %v2274_v43  ;;  %v323_v47 = vmul.f32 %v2241_v32, %v2195_v16  ;;  %v712_v53 = vld [vmem:[%s2508_s3] sm:$0xf]  ;;  %vm2352_vm5 = vmpackc.low %vm337_vm2, %vm337_vm2 }
  0x5e   : > { %1681 = vmatprep.subr.bf16.mxu0 %v1680_v11  ;;  %v324_v48 = vmul.f32 %v2250_v35, %v2202_v19  ;;  %v325_v49 = vmul.f32 %v2253_v36, %v2205_v20  ;;  %v326_v50 = vmul.f32 %v2262_v39, %v2214_v23  ;;  %v327_v51 = vmul.f32 %v2265_v40, %v2217_v24 }
  0x5f   : > { %v328_v52 = vmul.f32 %v2274_v43, %v2226_v27  ;;  %1618 = vmatprep.subr.msk.mxu1 %vm761_vm3, %v712_v53 }
  0x60   : > { %1619 = vmatpush3.msk.msra.mxu1 %vm761_vm3, %v712_v53 }
  0x61   : > { %1683 = vmatpush3.bf16.msra.mxu0 %v1680_v11 }
  0x62   : > { %1685 = vmatprep.subr.bf16.mxu0 %v1684_v14 }
  0x65   : > { %1687 = vmatpush3.bf16.msra.mxu0 %v1684_v14 }
  0x68   : > { %1583 = vmatmul.mubr.msk.f32.vlgmr.msra.gmra.mrb[0].mxu0 %vm337_vm2, %v306_v17 }
  0x69   : > { %1585 = vmatprep.mubr.msk.f32.mxu0 %vm337_vm2, %v307_v18 }
  0x6c   : > { %1586 = vmatmul.mubr.msk.f32.gmra.mrb[2].mxu0 %vm337_vm2, %v308_v21 }
  0x6d   : > { %1588 = vmatprep.mubr.msk.f32.mxu0 %vm337_vm2, %v309_v22 }
  0x70   : > { %1589 = vmatmul.mubr.msk.f32.gmra.mrb[4].mxu0 %vm337_vm2, %v310_v25 }
  0x71   : > { %1591 = vmatprep.mubr.msk.f32.mxu0 %vm337_vm2, %v311_v26 }
  0x74   : > { %1592 = vmatmul.mubr.msk.f32.gmra.mrb[6].mxu0 %vm337_vm2, %v312_v29 }
  0x75   : > { %1594 = vmatprep.mubr.msk.f32.mxu0 %vm337_vm2, %v313_v30 }
  0x78   : > { %1595 = vmatmul.mubr.msk.f32.gmra.mrb[8].mxu0 %vm337_vm2, %v314_v33 }
  0x79   : > { %1597 = vmatprep.mubr.msk.f32.mxu0 %vm337_vm2, %v315_v34 }
  0x7c   : > { %1598 = vmatmul.mubr.msk.f32.gmra.mrb[10].mxu0 %vm337_vm2, %v316_v37 }
  0x7d   : > { %1600 = vmatprep.mubr.msk.f32.mxu0 %vm337_vm2, %v317_v38 }
  0x80   : > { %1601 = vmatmul.mubr.msk.f32.gmra.mrb[12].mxu0 %vm337_vm2, %v318_v41 }
  0x81   : > { %1603 = vmatprep.mubr.msk.f32.mxu0 %vm337_vm2, %v319_v42 }
  0x84   : > { %1604 = vmatmul.mubr.msk.f32.gmra.mrb[14].mxu0 %vm337_vm2, %v320_v44 }
  0x85   : > { %1606 = vmatprep.mubr.msk.f32.mxu0 %vm337_vm2, %v321_v45 }
  0x88   : > { %1607 = vmatmul.mubr.msk.f32.gmra.mrb[16].mxu0 %vm337_vm2, %v322_v46 }
  0x89   : > { %1609 = vmatprep.mubr.msk.f32.mxu0 %vm337_vm2, %v323_v47 }
  0x8c   : > { %1610 = vmatmul.mubr.msk.f32.gmra.mrb[18].mxu0 %vm337_vm2, %v324_v48 }
  0x8d   : > { %1612 = vmatprep.mubr.msk.f32.mxu0 %vm337_vm2, %v325_v49 }
  0x90   : > { %1613 = vmatmul.mubr.msk.f32.gmra.mrb[20].mxu0 %vm337_vm2, %v326_v50 }
  0x91   : > { %1615 = vmatprep.mubr.msk.f32.mxu0 %vm337_vm2, %v327_v51 }
  0x94   : > { %1616 = vmatmul.mubr.msk.f32.gmra.mrb[22].mxu0 %vm337_vm2, %v328_v52 }
 0x13b   : > { %v1584_v54 = vpop.f32.mrb[0].mxu0 }
 0x13c   : > { %v596_v55 = vmax.f32 %v1584_v54, 1e-24  ;;  %v476_v56 = vpop.f32.mrb[1].mxu0 }
 0x13d   : > { %v595_v57 = vmax.f32 %v476_v56, 1e-24 }
 0x13f   : > { %1772 = vrsqrt.f32 %v595_v57  ;;  %v1587_v58 = vpop.f32.mrb[2].mxu0 }
 0x140   : > { %1774 = vrsqrt.f32 %v596_v55  ;;  %v598_v59 = vmax.f32 %v1587_v58, 1e-24  ;;  %v486_v60 = vpop.f32.mrb[3].mxu0 }
 0x141   : > { %v597_v61 = vmax.f32 %v486_v60, 1e-24 }
 0x143   : > { %1776 = vrsqrt.f32 %v597_v61  ;;  %v1590_v62 = vpop.f32.mrb[4].mxu0 }
 0x144   : > { %1778 = vrsqrt.f32 %v598_v59  ;;  %v600_v63 = vmax.f32 %v1590_v62, 1e-24  ;;  %v496_v0 = vpop.f32.mrb[5].mxu0 }
 0x145   : > { %v599_v1 = vmax.f32 %v496_v0, 1e-24 }
 0x147   : > { %1780 = vrsqrt.f32 %v599_v1  ;;  %v1593_v2 = vpop.f32.mrb[6].mxu0 }
 0x148   : > { %1782 = vrsqrt.f32 %v600_v63  ;;  %v602_v3 = vmax.f32 %v1593_v2, 1e-24  ;;  %v506_v4 = vpop.f32.mrb[7].mxu0 }
 0x149   : > { %v1773_v5 = vpop.eup %1772  ;;  %v601_v6 = vmax.f32 %v506_v4, 1e-24 }
 0x14a   : > { %v1775_v7 = vpop.eup %1774  ;;  %1620 = vmatprep.mubr.msk.f32.mxu1 %vm676_vm4, %v1773_v5 }
 0x14b   : > { %1784 = vrsqrt.f32 %v601_v6  ;;  %v1596_v8 = vpop.f32.mrb[8].mxu0  ;;  %1621 = vmatmul.mubr.msk.f32.vlgmr.msra.gmra.mrb[0].mxu1 %vm676_vm4, %v1775_v7 }
 0x14c   : > { %1786 = vrsqrt.f32 %v602_v3  ;;  %v612_v10 = vmax.f32 %v1596_v8, 1e-24  ;;  %v516_v11 = vpop.f32.mrb[9].mxu0 }
 0x14d   : > { %v1777_v12 = vpop.eup %1776  ;;  %v611_v13 = vmax.f32 %v516_v11, 1e-24 }
 0x14e   : > { %v1779_v14 = vpop.eup %1778  ;;  %1788 = vrsqrt.f32 %v612_v10  ;;  %1623 = vmatprep.mubr.msk.f32.mxu1 %vm676_vm4, %v1777_v12 }
 0x14f   : > { %1790 = vrsqrt.f32 %v611_v13  ;;  %v1599_v17 = vpop.f32.mrb[10].mxu0  ;;  %1624 = vmatmul.mubr.msk.f32.gmra.mrb[2].mxu1 %vm676_vm4, %v1779_v14 }
 0x150   : > { %v614_v18 = vmax.f32 %v1599_v17, 1e-24  ;;  %v526_v21 = vpop.f32.mrb[11].mxu0 }
 0x151   : > { %v1781_v22 = vpop.eup %1780  ;;  %v613_v25 = vmax.f32 %v526_v21, 1e-24 }
 0x152   : > { %v1783_v26 = vpop.eup %1782  ;;  %1792 = vrsqrt.f32 %v614_v18  ;;  %1626 = vmatprep.mubr.msk.f32.mxu1 %vm676_vm4, %v1781_v22 }
 0x153   : > { %1794 = vrsqrt.f32 %v613_v25  ;;  %v1602_v29 = vpop.f32.mrb[12].mxu0  ;;  %1627 = vmatmul.mubr.msk.f32.gmra.mrb[4].mxu1 %vm676_vm4, %v1783_v26 }
 0x154   : > { %v616_v30 = vmax.f32 %v1602_v29, 1e-24  ;;  %v536_v33 = vpop.f32.mrb[13].mxu0 }
 0x155   : > { %v2314_v34 = vpop.eup %1784  ;;  %v615_v37 = vmax.f32 %v536_v33, 1e-24 }
 0x156   : > { %v1787_v38 = vpop.eup %1786  ;;  %1796 = vrsqrt.f32 %v616_v30  ;;  %1629 = vmatprep.mubr.msk.f32.mxu1 %vm676_vm4, %v2314_v34 }
 0x157   : > { %1798 = vrsqrt.f32 %v615_v37  ;;  %v1605_v41 = vpop.f32.mrb[14].mxu0  ;;  %1630 = vmatmul.mubr.msk.f32.gmra.mrb[6].mxu1 %vm676_vm4, %v1787_v38 }
 0x158   : > { %v1789_v42 = vpop.eup %1788  ;;  %v618_v44 = vmax.f32 %v1605_v41, 1e-24  ;;  %v546_v45 = vpop.f32.mrb[15].mxu0 }
 0x159   : > { %v1791_v46 = vpop.eup %1790  ;;  %v617_v47 = vmax.f32 %v546_v45, 1e-24  ;;  %v628_v48 = vmul.f32 %v1789_v42, %v1775_v7 }
 0x15a   : > { %1800 = vrsqrt.f32 %v618_v44  ;;  %1632 = vmatprep.mubr.msk.f32.mxu1 %vm676_vm4, %v1791_v46  ;;  %v627_v49 = vmul.f32 %v1791_v46, %v1773_v5 }
 0x15b   : > { %1802 = vrsqrt.f32 %v617_v47  ;;  %v1608_v50 = vpop.f32.mrb[16].mxu0  ;;  %1633 = vmatmul.mubr.msk.f32.gmra.mrb[8].mxu1 %vm676_vm4, %v1789_v42 }
 0x15c   : > { %v1793_v51 = vpop.eup %1792  ;;  %v636_v52 = vmul.f32 %v1608_v50, %v628_v48  ;;  %v556_v53 = vpop.f32.mrb[17].mxu0 }
 0x15d   : > { %v1795_v54 = vpop.eup %1794  ;;  %v635_v55 = vmul.f32 %v627_v49, %v556_v53  ;;  %v630_v56 = vmul.f32 %v1793_v51, %v1779_v14 }
 0x15e   : > { %v644_v57 = vmul.f32 2.0, %v636_v52  ;;  %1635 = vmatprep.mubr.msk.f32.mxu1 %vm676_vm4, %v1795_v54  ;;  %v629_v58 = vmul.f32 %v1795_v54, %v1777_v12 }
 0x15f   : > { %v643_v59 = vmul.f32 2.0, %v635_v55  ;;  %v1611_v60 = vpop.f32.mrb[18].mxu0  ;;  %1636 = vmatmul.mubr.msk.f32.gmra.mrb[10].mxu1 %vm676_vm4, %v1793_v51 }
 0x160   : > { %v1797_v61 = vpop.eup %1796  ;;  %v1446_v62 = vadd.f32 -2.0, %v644_v57  ;;  %v696_v63 = vsel %vm676_vm4, %v644_v57, 0.0  ;;  %v638_v0 = vmul.f32 %v1611_v60, %v630_v56  ;;  %v566_v1 = vpop.f32.mrb[19].mxu0 }
 0x161   : > { %v1799_v2 = vpop.eup %1798  ;;  %v1445_v3 = vadd.f32 -2.0, %v643_v59  ;;  %v695_v4 = vsel %vm676_vm4, %v643_v59, 0.0  ;;  %v637_v5 = vmul.f32 %v629_v58, %v566_v1  ;;  %v632_v6 = vmul.f32 %v1797_v61, %v1783_v26 }
 0x162   : > { %v661_v7 = vmul.f32 1.442695, %v1446_v62  ;;  %v697_v8 = vadd.f32 %v696_v63, %v695_v4  ;;  %v646_v10 = vmul.f32 2.0, %v638_v0  ;;  %v631_v11 = vmul.f32 %v1799_v2, %v1781_v22  ;;  %1638 = vmatprep.mubr.msk.f32.mxu1 %vm676_vm4, %v1799_v2 }
 0x163   : > { %v659_v12 = vmul.f32 1.442695, %v1445_v3  ;;  %v645_v13 = vmul.f32 2.0, %v637_v5  ;;  %v1614_v14 = vpop.f32.mrb[20].mxu0  ;;  %1639 = vmatmul.mubr.msk.f32.gmra.mrb[12].mxu1 %vm676_vm4, %v1797_v61 }
 0x164   : > { %v1801_v17 = vpop.eup %1800  ;;  %1804 = vpow2.f32 %v661_v7  ;;  %v1448_v18 = vadd.f32 -2.0, %v646_v10  ;;  %v640_v21 = vmul.f32 %v1614_v14, %v632_v6  ;;  %v576_v25 = vpop.f32.mrb[21].mxu0  ;;  %v700_v44 = vsel %vm676_vm4, %v646_v10, 0.0 }
 0x165   : > { %v1803_v29 = vpop.eup %1802  ;;  %1806 = vpow2.f32 %v659_v12  ;;  %v1447_v30 = vadd.f32 -2.0, %v645_v13  ;;  %v698_v26 = vsel %vm676_vm4, %v645_v13, 0.0  ;;  %v639_v33 = vmul.f32 %v631_v11, %v576_v25 }
 0x166   : > { %v665_v37 = vmul.f32 1.442695, %v1448_v18  ;;  %v699_v22 = vadd.f32 %v698_v26, %v697_v8  ;;  %v648_v41 = vmul.f32 2.0, %v640_v21  ;;  %v634_v42 = vmul.f32 %v1801_v17, %v1787_v38  ;;  %1641 = vmatprep.mubr.msk.f32.mxu1 %vm676_vm4, %v1803_v29  ;;  %v694_v8 = vld [vmem:[#allocation3] sm:$0xff] }
 0x167   : > { %v663_v45 = vmul.f32 1.442695, %v1447_v30  ;;  %v647_v46 = vmul.f32 2.0, %v639_v33  ;;  %v1617_v47 = vpop.f32.mrb[22].mxu0  ;;  %v633_v48 = vmul.f32 %v1803_v29, %v2314_v34  ;;  %1642 = vmatmul.mubr.msk.f32.gmra.mrb[14].mxu1 %vm676_vm4, %v1801_v17 }
 0x168   : > { %1808 = vpow2.f32 %v665_v37  ;;  %v1450_v49 = vadd.f32 -2.0, %v648_v41  ;;  %v701_v50 = vadd.f32 %v700_v44, %v699_v22  ;;  %v586_v51 = vpop.f32.mrb[23].mxu0  ;;  %v642_v38 = vmul.f32 %v1617_v47, %v634_v42  ;;  %v675_v47 = vld [vmem:[#allocation2] sm:$0xff] }
 0x169   : > { %1810 = vpow2.f32 %v663_v45  ;;  %v1449_v52 = vadd.f32 -2.0, %v647_v46  ;;  %v702_v53 = vsel %vm676_vm4, %v647_v46, 0.0  ;;  %v641_v56 = vmul.f32 %v633_v48, %v586_v51 }
 0x16a   : > { %v669_v54 = vmul.f32 1.442695, %v1450_v49  ;;  %v703_v55 = vadd.f32 %v702_v53, %v701_v50  ;;  %v704_v57 = vsel %vm676_vm4, %v648_v41, 0.0  ;;  %v650_v59 = vmul.f32 2.0, %v642_v38 }
 0x16b   : > { %v667_v58 = vmul.f32 1.442695, %v1449_v52  ;;  %v649_v34 = vmul.f32 2.0, %v641_v56 }
 0x16c   : > { %1812 = vpow2.f32 %v669_v54  ;;  %v705_v60 = vadd.f32 %v704_v57, %v703_v55  ;;  %v1452_v61 = vadd.f32 -2.0, %v650_v59  ;;  %v708_v6 = vsel %vm676_vm4, %v650_v59, 0.0 }
 0x16d   : > { %1814 = vpow2.f32 %v667_v58  ;;  %v1451_v63 = vadd.f32 -2.0, %v649_v34  ;;  %v706_v0 = vsel %vm676_vm4, %v649_v34, 0.0 }
 0x16e   : > { %v1805_v62 = vpop.eup %1804  ;;  %v673_v3 = vmul.f32 1.442695, %v1452_v61  ;;  %v707_v4 = vadd.f32 %v706_v0, %v705_v60  ;;  %v1090_v61 = vld [vmem:[%s2509_s4 + $0x18] sm:$0xff] }
 0x16f   : > { %v1807_v1 = vpop.eup %1806  ;;  %v678_v2 = vsel %vm676_vm4, %v1805_v62, 0.0  ;;  %v671_v7 = vmul.f32 1.442695, %v1451_v63 }
 0x170   : > { %v677_v5 = vsel %vm676_vm4, %v1807_v1, 0.0  ;;  %1816 = vpow2.f32 %v673_v3  ;;  %v709_v11 = vadd.f32 %v708_v6, %v707_v4 }
 0x171   : > { %v679_v10 = vadd.f32 %v678_v2, %v677_v5  ;;  %1818 = vpow2.f32 %v671_v7 }
 0x172   : > { %v1809_v12 = vpop.eup %1808  ;;  %v710_v14 = vadd.f32 %v709_v11, %v694_v8 }
 0x173   : > { %v1811_v13 = vpop.eup %1810  ;;  %v682_v25 = vsel %vm676_vm4, %v1809_v12, 0.0 }
 0x174   : > { %v680_v17 = vsel %vm676_vm4, %v1811_v13, 0.0  ;;  %711 = vst.msk [vmem:[#allocation3] sm:$0xff] %vm676_vm4, %v710_v14 }
 0x175   : > { %v681_v18 = vadd.f32 %v680_v17, %v679_v10 }
 0x176   : > { %v1813_v21 = vpop.eup %1812 }
 0x177   : > { %v1815_v29 = vpop.eup %1814  ;;  %v683_v30 = vadd.f32 %v682_v25, %v681_v18  ;;  %v686_v37 = vsel %vm676_vm4, %v1813_v21, 0.0 }
 0x178   : > { %v684_v26 = vsel %vm676_vm4, %v1815_v29, 0.0 }
 0x179   : > { %v685_v33 = vadd.f32 %v684_v26, %v683_v30 }
 0x17a   : > { %v1817_v22 = vpop.eup %1816 }
 0x17b   : > { %v687_v41 = vadd.f32 %v686_v37, %v685_v33  ;;  %v1819_v42 = vpop.eup %1818  ;;  %v690_v46 = vsel %vm676_vm4, %v1817_v22, 0.0 }
 0x17c   : > { %v688_v44 = vsel %vm676_vm4, %v1819_v42, 0.0 }
 0x17d   : > { %v689_v45 = vadd.f32 %v688_v44, %v687_v41 }
 0x17f   : > { %v691_v48 = vadd.f32 %v690_v46, %v689_v45 }
 0x181   : > { %v692_v49 = vadd.f32 %v691_v48, %v675_v47 }
 0x183   : > { %693 = vst.msk [vmem:[#allocation2] sm:$0xff] %vm676_vm4, %v692_v49 }
 0x21e   : > { %v1622_v50 = vpop.f32.mrb[0].mxu1 }
 0x21f   : > { %v831_v51 = vpop.f32.mrb[1].mxu1 }
 0x220   : > { %v910_v52 = vmul.f32 %v831_v51, %v2180_v9 }
 0x222   : > { %v1625_v53 = vpop.f32.mrb[2].mxu1  ;;  %1660 = vmatprep.mubr.msk.f32.mxu1 %vm337_vm2, %v910_v52 }
 0x223   : > { %v841_v38 = vpop.f32.mrb[3].mxu1 }
 0x226   : > { %v1628_v54 = vpop.f32.mrb[4].mxu1 }
 0x227   : > { %v851_v55 = vpop.f32.mrb[5].mxu1  ;;  %v915_v10 = vmul.f32 %v1628_v54, %v2214_v23  ;;  %v1088_v54 = vld [vmem:[%s2509_s4 + $0x8] sm:$0xff] }
 0x228   : > { %v914_v8 = vmul.f32 %v851_v55, %v2205_v20 }
 0x22a   : > { %v1631_v56 = vpop.f32.mrb[6].mxu1 }
 0x22b   : > { %v861_v57 = vpop.f32.mrb[7].mxu1 }
 0x22c   : > { %v916_v11 = vmul.f32 %v861_v57, %v2217_v24 }
 0x22e   : > { %v1634_v58 = vpop.f32.mrb[8].mxu1 }
 0x22f   : > { %v919_v59 = vmul.f32 %v1634_v58, %v2238_v31  ;;  %v871_v34 = vpop.f32.mrb[9].mxu1  ;;  %v1087_v58 = vld [vmem:[%s2509_s4] sm:$0xff] }
 0x230   : > { %v918_v60 = vmul.f32 %v871_v34, %v2229_v28 }
 0x232   : > { %v1688_v9 = vpack.c.bf16 %v919_v59, %v918_v60  ;;  %v1637_v62 = vpop.f32.mrb[10].mxu1 }
 0x233   : > { %v921_v63 = vmul.f32 %v1637_v62, %v2250_v35  ;;  %v881_v0 = vpop.f32.mrb[11].mxu1 }
 0x234   : > { %v920_v1 = vmul.f32 %v881_v0, %v2241_v32  ;;  %1690 = vmatprep.subr.msk.bf16.mxu1 %vm2352_vm5, %v1688_v9 }
 0x235   : > { %1693 = vmatpush3.bf16.xpose.msk.msra.mxu1 %vm2352_vm5, %v1688_v9 }
 0x236   : > { %v1694_v28 = vpack.c.bf16 %v921_v63, %v920_v1  ;;  %v1640_v31 = vpop.f32.mrb[12].mxu1  ;;  %v1089_v63 = vld [vmem:[%s2509_s4 + $0x10] sm:$0xff] }
 0x237   : > { %v923_v2 = vmul.f32 %v1640_v31, %v2262_v39  ;;  %v891_v3 = vpop.f32.mrb[13].mxu1 }
 0x238   : > { %1696 = vmatprep.subr.msk.bf16.mxu1 %vm2352_vm5, %v1694_v28  ;;  %v922_v4 = vmul.f32 %v891_v3, %v2253_v36  ;;  %v911_v36 = vmul.f32 %v1622_v50, %v2192_v15  ;;  %v917_v15 = vmul.f32 %v1631_v56, %v2226_v27  ;;  %v1091_v3 = vld [vmem:[%s2509_s4 + $0x20] sm:$0xff] }
 0x23a   : > { %v1700_v35 = vpack.c.bf16 %v923_v2, %v922_v4  ;;  %v1643_v5 = vpop.f32.mrb[14].mxu1 }
 0x23b   : > { %v925_v32 = vmul.f32 %v1643_v5, %v2274_v43  ;;  %v901_v6 = vpop.f32.mrb[15].mxu1  ;;  %v913_v43 = vmul.f32 %v1625_v53, %v2202_v19 }
 0x23c   : > { %v924_v7 = vmul.f32 %v901_v6, %v2265_v40  ;;  %v912_v40 = vmul.f32 %v841_v38, %v2195_v16 }
 0x23d   : > { %1699 = vmatpush3.bf16.xpose.msk.msra.mxu1 %vm2352_vm5, %v1694_v28 }
 0x23e   : > { %1702 = vmatprep.subr.msk.bf16.mxu1 %vm2352_vm5, %v1700_v35  ;;  %v1706_v39 = vpack.c.bf16 %v925_v32, %v924_v7 }
 0x245   : > { %1705 = vmatpush3.bf16.xpose.msk.msra.mxu1 %vm2352_vm5, %v1700_v35  ;;  %v1092_v35 = vld [vmem:[%s2509_s4 + $0x28] sm:$0xff] }
 0x246   : > { %1708 = vmatprep.subr.msk.bf16.mxu1 %vm2352_vm5, %v1706_v39 }
 0x24d   : > { %1711 = vmatpush3.bf16.xpose.msk.msra.mxu1 %vm2352_vm5, %v1706_v39 }
 0x254   : > { %1661 = vmatmul.mubr.msk.f32.vlgmr.msra.gmra.mrb[16].mxu1 %vm337_vm2, %v911_v36  ;;  %v1093_v36 = vld [vmem:[%s2509_s4 + $0x30] sm:$0xff] }
 0x255   : > { %1663 = vmatprep.mubr.msk.f32.mxu1 %vm337_vm2, %v912_v40 }
 0x258   : > { %1664 = vmatmul.mubr.msk.f32.gmra.mrb[18].mxu1 %vm337_vm2, %v913_v43  ;;  %v1094_v43 = vld [vmem:[%s2509_s4 + $0x38] sm:$0xff] }
 0x259   : > { %1666 = vmatprep.mubr.msk.f32.mxu1 %vm337_vm2, %v914_v8 }
 0x25c   : > { %1667 = vmatmul.mubr.msk.f32.gmra.mrb[20].mxu1 %vm337_vm2, %v915_v10 }
 0x25d   : > { %1669 = vmatprep.mubr.msk.f32.mxu1 %vm337_vm2, %v916_v11 }
 0x260   : > { %1670 = vmatmul.mubr.msk.f32.gmra.mrb[22].mxu1 %vm337_vm2, %v917_v15 }
 0x327   : > { %v1662_v16 = vpop.f32.mrb[16].mxu1 }
 0x328   : > { %v2392_v19 = vmul.f32 2.0, %v1662_v16  ;;  %v1040_v20 = vpop.f32.mrb[17].mxu1 }
 0x329   : > { %v2394_v12 = vmul.f32 2.0, %v1040_v20 }
 0x32a   : > { %v1487_v13 = vadd.f32 -2.0, %v2392_v19  ;;  %v1152_v20 = vmul.f32 %v1088_v54, %v2392_v19 }
 0x32b   : > { %v1486_v23 = vadd.f32 -2.0, %v2394_v12  ;;  %v1665_v14 = vpop.f32.mrb[18].mxu1  ;;  %v1151_v15 = vmul.f32 %v1087_v58, %v2394_v12 }
 0x32c   : > { %v1105_v24 = vmul.f32 1.442695, %v1487_v13  ;;  %v2398_v17 = vmul.f32 2.0, %v1665_v14  ;;  %v1050_v18 = vpop.f32.mrb[19].mxu1  ;;  %v1162_v14 = vsel %vm337_vm2, %v1152_v20, 0.0 }
 0x32d   : > { %v1103_v21 = vmul.f32 1.442695, %v1486_v23  ;;  %v2400_v25 = vmul.f32 2.0, %v1050_v18  ;;  %v1159_v13 = vsel %vm337_vm2, %v1151_v15, 0.0  ;;  %v1227_v15 = vld [vmem:[#allocation4 + $0x20] sm:$0xff] }
 0x32e   : > { %1820 = vpow2.f32 %v1105_v24  ;;  %v1489_v27 = vadd.f32 -2.0, %v2398_v17  ;;  %v1154_v24 = vmul.f32 %v1090_v61, %v2398_v17 }
 0x32f   : > { %1822 = vpow2.f32 %v1103_v21  ;;  %v1488_v29 = vadd.f32 -2.0, %v2400_v25  ;;  %v1668_v30 = vpop.f32.mrb[20].mxu1  ;;  %v1153_v23 = vmul.f32 %v1089_v63, %v2400_v25 }
 0x330   : > { %v1109_v26 = vmul.f32 1.442695, %v1489_v27  ;;  %v2404_v33 = vmul.f32 2.0, %v1668_v30  ;;  %v1060_v37 = vpop.f32.mrb[21].mxu1  ;;  %v1168_v21 = vsel %vm337_vm2, %v1154_v24, 0.0 }
 0x331   : > { %v1107_v22 = vmul.f32 1.442695, %v1488_v29  ;;  %v2406_v41 = vmul.f32 2.0, %v1060_v37  ;;  %v1165_v18 = vsel %vm337_vm2, %v1153_v23, 0.0 }
 0x332   : > { %1824 = vpow2.f32 %v1109_v26  ;;  %v1491_v42 = vadd.f32 -2.0, %v2404_v33  ;;  %v1156_v19 = vmul.f32 %v1092_v35, %v2404_v33 }
 0x333   : > { %1826 = vpow2.f32 %v1107_v22  ;;  %v1490_v44 = vadd.f32 -2.0, %v2406_v41  ;;  %v1671_v45 = vpop.f32.mrb[22].mxu1  ;;  %v1155_v12 = vmul.f32 %v1091_v3, %v2406_v41 }
 0x334   : > { %v1113_v46 = vmul.f32 1.442695, %v1491_v42  ;;  %v2410_v47 = vmul.f32 2.0, %v1671_v45  ;;  %v1070_v48 = vpop.f32.mrb[23].mxu1  ;;  %v1174_v25 = vsel %vm337_vm2, %v1156_v19, 0.0 }
 0x335   : > { %v1111_v49 = vmul.f32 1.442695, %v1490_v44  ;;  %v1085_v50 = vmul.f32 2.0, %v1070_v48  ;;  %v1171_v29 = vsel %vm337_vm2, %v1155_v12, 0.0 }
 0x336   : > { %1828 = vpow2.f32 %v1113_v46  ;;  %v1493_v51 = vadd.f32 -2.0, %v2410_v47  ;;  %v1158_v30 = vmul.f32 %v1094_v43, %v2410_v47 }
 0x337   : > { %1830 = vpow2.f32 %v1111_v49  ;;  %v1492_v52 = vadd.f32 -2.0, %v1085_v50  ;;  %v1157_v27 = vmul.f32 %v1093_v36, %v1085_v50 }
 0x338   : > { %v1821_v53 = vpop.eup %1820  ;;  %v1117_v38 = vmul.f32 1.442695, %v1493_v51  ;;  %v1180_v26 = vsel %vm337_vm2, %v1158_v30, 0.0 }
 0x339   : > { %v1823_v55 = vpop.eup %1822  ;;  %v1115_v56 = vmul.f32 1.442695, %v1492_v52  ;;  %v1120_v57 = vmul.f32 %v1821_v53, %v1088_v54  ;;  %v1177_v17 = vsel %vm337_vm2, %v1157_v27, 0.0  ;;  %v1228_v27 = vld [vmem:[#allocation4 + $0x28] sm:$0xff] }
 0x33a   : > { %1832 = vpow2.f32 %v1117_v38  ;;  %v1119_v34 = vmul.f32 %v1823_v55, %v1087_v58 }
 0x33b   : > { %1834 = vpow2.f32 %v1115_v56  ;;  %v1130_v59 = vsel %vm337_vm2, %v1120_v57, 0.0 }
 0x33c   : > { %v1825_v60 = vpop.eup %1824  ;;  %1131 = vadd.xlane.f32.xlu0 %v1130_v59  ;;  %v1127_v0 = vsel %vm337_vm2, %v1119_v34, 0.0 }
 0x33d   : > { %v1827_v9 = vpop.eup %1826  ;;  %v1122_v62 = vmul.f32 %v1825_v60, %v1090_v61  ;;  %v1224_v60 = vld [vmem:[#allocation4 + $0x8] sm:$0xff] }
 0x33e   : > { %v1121_v28 = vmul.f32 %v1827_v9, %v1089_v63 }
 0x33f   : > { %v1136_v1 = vsel %vm337_vm2, %v1122_v62, 0.0  ;;  %v1223_v62 = vld [vmem:[#allocation4] sm:$0xff] }
 0x340   : > { %v1829_v31 = vpop.eup %1828  ;;  %1128 = vadd.xlane.f32.xlu0 %v1127_v0  ;;  %1137 = vadd.xlane.f32.xlu1 %v1136_v1  ;;  %v1133_v5 = vsel %vm337_vm2, %v1121_v28, 0.0 }
 0x341   : > { %v1831_v2 = vpop.eup %1830  ;;  %v1124_v32 = vmul.f32 %v1829_v31, %v1092_v35 }
 0x342   : > { %v1123_v4 = vmul.f32 %v1831_v2, %v1091_v3 }
 0x343   : > { %v1142_v8 = vsel %vm337_vm2, %v1124_v32, 0.0 }
 0x344   : > { %v1833_v6 = vpop.eup %1832  ;;  %1134 = vadd.xlane.f32.xlu1 %v1133_v5  ;;  %v1139_v7 = vsel %vm337_vm2, %v1123_v4, 0.0 }
 0x345   : > { %v1835_v39 = vpop.eup %1834  ;;  %1140 = vadd.xlane.f32.xlu0 %v1139_v7  ;;  %v1126_v10 = vmul.f32 %v1833_v6, %v1094_v43  ;;  %v1226_v7 = vld [vmem:[#allocation4 + $0x18] sm:$0xff] }
 0x346   : > { %v1125_v40 = vmul.f32 %v1835_v39, %v1093_v36 }
 0x347   : > { %v1148_v16 = vsel %vm337_vm2, %v1126_v10, 0.0 }
 0x348   : > { %1143 = vadd.xlane.f32.xlu1 %v1142_v8  ;;  %v1145_v11 = vsel %vm337_vm2, %v1125_v40, 0.0  ;;  %v1225_v40 = vld [vmem:[#allocation4 + $0x10] sm:$0xff] }
 0x349   : > { %1146 = vadd.xlane.f32.xlu0 %v1145_v11 }
 0x34c   : > { %1149 = vadd.xlane.f32.xlu1 %v1148_v16 }
 0x34d   : > { %1160 = vadd.xlane.f32.xlu0 %v1159_v13 }
 0x350   : > { %1163 = vadd.xlane.f32.xlu1 %v1162_v14 }
 0x351   : > { %1166 = vadd.xlane.f32.xlu0 %v1165_v18 }
 0x354   : > { %1169 = vadd.xlane.f32.xlu1 %v1168_v21 }
 0x355   : > { %1172 = vadd.xlane.f32.xlu0 %v1171_v29 }
 0x358   : > { %1175 = vadd.xlane.f32.xlu1 %v1174_v25 }
 0x359   : > { %1178 = vadd.xlane.f32.xlu0 %v1177_v17  ;;  %v1229_v17 = vld [vmem:[#allocation4 + $0x30] sm:$0xff] }
 0x35c   : > { %1181 = vadd.xlane.f32.xlu1 %v1180_v26 }
 0x3c9   : > { %v1132_v37 = vpop.xlane.xlu0 %1131 }
 0x3ca   : > { %1836 = vlog2.f32 %v1132_v37 }
 0x3cd   : > { %v1129_v22 = vpop.xlane.xlu0 %1128  ;;  %v1138_v33 = vpop.xlane.xlu1 %1137 }
 0x3ce   : > { %1838 = vlog2.f32 %v1129_v22 }
 0x3cf   : > { %1840 = vlog2.f32 %v1138_v33 }
 0x3d1   : > { %v1135_v41 = vpop.xlane.xlu1 %1134 }
 0x3d2   : > { %1842 = vlog2.f32 %v1135_v41  ;;  %v1141_v42 = vpop.xlane.xlu0 %1140 }
 0x3d3   : > { %1844 = vlog2.f32 %v1141_v42 }
 0x3d4   : > { %v1837_v44 = vpop.eup %1836 }
 0x3d5   : > { %v1186_v45 = vmul.f32 0.6931472, %v1837_v44  ;;  %v1144_v46 = vpop.xlane.xlu1 %1143  ;;  %v1230_v44 = vld [vmem:[#allocation4 + $0x38] sm:$0xff] }
 0x3d6   : > { %1846 = vlog2.f32 %v1144_v46  ;;  %v1147_v47 = vpop.xlane.xlu0 %1146 }
 0x3d7   : > { %1848 = vlog2.f32 %v1147_v47  ;;  %v1200_v49 = vadd.f32 2.0, %v1186_v45 }
 0x3d8   : > { %v1839_v48 = vpop.eup %1838 }
 0x3d9   : > { %v1841_v50 = vpop.eup %1840  ;;  %v1184_v51 = vmul.f32 0.6931472, %v1839_v48  ;;  %v1150_v52 = vpop.xlane.xlu1 %1149  ;;  %v1208_v56 = vmul.f32 7.0, %v1200_v49 }
 0x3da   : > { %v1190_v53 = vmul.f32 0.6931472, %v1841_v50  ;;  %1850 = vlog2.f32 %v1150_v52  ;;  %v1161_v38 = vpop.xlane.xlu0 %1160 }
 0x3db   : > { %v1199_v54 = vadd.f32 2.0, %v1184_v51 }
 0x3dc   : > { %v1843_v55 = vpop.eup %1842  ;;  %v1202_v57 = vadd.f32 2.0, %v1190_v53 }
 0x3dd   : > { %v1845_v58 = vpop.eup %1844  ;;  %v1188_v59 = vmul.f32 0.6931472, %v1843_v55  ;;  %v1207_v34 = vmul.f32 7.0, %v1199_v54  ;;  %v1164_v61 = vpop.xlane.xlu1 %1163  ;;  %v1260_v55 = vld [vmem:[#allocation2] sm:$0xff] (!%p1494_p11) }
 0x3de   : > { %v1192_v9 = vmul.f32 0.6931472, %v1845_v58  ;;  %v1216_v63 = vsub.f32 %v1208_v56, %v1164_v61  ;;  %v1167_v0 = vpop.xlane.xlu0 %1166  ;;  %v1210_v3 = vmul.f32 7.0, %v1202_v57  ;;  %1852 = vlog2.f32 (!%p1494_p11), %v1260_v55 }
 0x3df   : > { %v1215_v1 = vsub.f32 %v1207_v34, %v1161_v38  ;;  %v1201_v28 = vadd.f32 2.0, %v1188_v59 }
 0x3e0   : > { %v1847_v31 = vpop.eup %1846  ;;  %v1240_v2 = vadd.f32 %v1224_v60, %v1216_v63  ;;  %v1203_v4 = vadd.f32 2.0, %v1192_v9 }
 0x3e1   : > { %v1849_v35 = vpop.eup %1848  ;;  %v1194_v5 = vmul.f32 0.6931472, %v1847_v31  ;;  %v1239_v32 = vadd.f32 %v1223_v62, %v1215_v1  ;;  %v1209_v6 = vmul.f32 7.0, %v1201_v28  ;;  %v1170_v39 = vpop.xlane.xlu1 %1169 }
 0x3e2   : > { %v1196_v36 = vmul.f32 0.6931472, %v1849_v35  ;;  %1249 = vst.msk [vmem:[#allocation4 + $0x8] sm:$0xff] %vm1247_vm6, %v1240_v2  ;;  %v1218_v43 = vsub.f32 %v1210_v3, %v1170_v39  ;;  %v1211_v8 = vmul.f32 7.0, %v1203_v4  ;;  %v1173_v10 = vpop.xlane.xlu0 %1172  ;;  %v1275_v35 = vld [vmem:[#allocation3] sm:$0xff] (!%p1494_p11) }
 0x3e3   : > { %1248 = vst.msk [vmem:[#allocation4] sm:$0xff] %vm1247_vm6, %v1239_v32  ;;  %v1217_v11 = vsub.f32 %v1209_v6, %v1167_v0  ;;  %v1204_v16 = vadd.f32 2.0, %v1194_v5  ;;  %v1276_v32 = vsel (!%p1494_p11), %vm676_vm4, %v1275_v35, 0.0 }
 0x3e4   : > { %v1851_v20 = vpop.eup %1850  ;;  %v1242_v13 = vadd.f32 %v1226_v7, %v1218_v43  ;;  %v1219_v23 = vsub.f32 %v1211_v8, %v1173_v10  ;;  %v1205_v14 = vadd.f32 2.0, %v1196_v36 }
 0x3e5   : > { %v1198_v24 = vmul.f32 0.6931472, %v1851_v20  ;;  %v1241_v18 = vadd.f32 %v1225_v40, %v1217_v11  ;;  %v1212_v12 = vmul.f32 7.0, %v1204_v16  ;;  %v1176_v21 = vpop.xlane.xlu1 %1175 }
 0x3e6   : > { %1251 = vst.msk [vmem:[#allocation4 + $0x18] sm:$0xff] %vm1247_vm6, %v1242_v13  ;;  %v1243_v19 = vadd.f32 %v1227_v15, %v1219_v23  ;;  %v1213_v29 = vmul.f32 7.0, %v1205_v14  ;;  %v1179_v25 = vpop.xlane.xlu0 %1178 }
 0x3e7   : > { %1250 = vst.msk [vmem:[#allocation4 + $0x10] sm:$0xff] %vm1247_vm6, %v1241_v18  ;;  %v1220_v30 = vsub.f32 %v1212_v12, %v1176_v21  ;;  %v1206_v26 = vadd.f32 2.0, %v1198_v24 }
 0x3e8   : > { %1252 = vst.msk [vmem:[#allocation4 + $0x20] sm:$0xff] %vm1247_vm6, %v1243_v19  ;;  %v1221_v37 = vsub.f32 %v1213_v29, %v1179_v25  ;;  %v1853_v31 = vpop.eup (!%p1494_p11), %1852 }
 0x3e9   : > { %v1244_v22 = vadd.f32 %v1228_v27, %v1220_v30  ;;  %v1214_v33 = vmul.f32 7.0, %v1206_v26  ;;  %v1182_v41 = vpop.xlane.xlu1 %1181  ;;  %1259 = sbr.rel (%p1494_p11) target bundleno = 1231 (0x4cf), region = 56  ;;  %v1291_v48 = vld [vmem:[#allocation4 + $0x8] sm:$0xff] (!%p1494_p11)  ;;  %v1262_v3 = vmul.f32 (!%p1494_p11), 0.6931472, %v1853_v31 }
 0x3ea   : > { %v1245_v42 = vadd.f32 %v1229_v17, %v1221_v37  ;;  %v1290_v47 = vld [vmem:[#allocation4] sm:$0xff] (!%p1494_p11)  ;;  %v1299_v52 = vsel (!%p1494_p11), %vm1247_vm6, %v1291_v48, 0.0 }
 0x3eb   : > { %1253 = vst.msk [vmem:[#allocation4 + $0x28] sm:$0xff] %vm1247_vm6, %v1244_v22  ;;  %v1222_v45 = vsub.f32 %v1214_v33, %v1182_v41  ;;  %v1298_v51 = vsel (!%p1494_p11), %vm1247_vm6, %v1290_v47, 0.0  ;;  %v1263_v4 = vadd.f32 (!%p1494_p11), 2.0, %v1262_v3 }
 0x3ec   : > { %1254 = vst.msk [vmem:[#allocation4 + $0x30] sm:$0xff] %vm1247_vm6, %v1245_v42  ;;  %v1300_v54 = vadd.f32 (!%p1494_p11), %v1299_v52, %v1298_v51 }
 0x3ed   : > { %v1246_v46 = vadd.f32 %v1230_v44, %v1222_v45  ;;  %v1293_v50 = vld [vmem:[#allocation4 + $0x18] sm:$0xff] (!%p1494_p11)  ;;  %v1264_v5 = vsel (!%p1494_p11), %vm676_vm4, %v1263_v4, 0.0 }
 0x3ee   : > { %v1292_v49 = vld [vmem:[#allocation4 + $0x10] sm:$0xff] (!%p1494_p11)  ;;  %v1303_v56 = vsel (!%p1494_p11), %vm1247_vm6, %v1293_v50, 0.0  ;;  %1265 = vadd.xlane.f32.xlu0 (!%p1494_p11), %v1264_v5 }
 0x3ef   : > { %1255 = vst.msk [vmem:[#allocation4 + $0x38] sm:$0xff] %vm1247_vm6, %v1246_v46  ;;  %v1301_v53 = vsel (!%p1494_p11), %vm1247_vm6, %v1292_v49, 0.0  ;;  %v1294_v38 = vld [vmem:[#allocation4 + $0x20] sm:$0xff] (!%p1494_p11) }
 0x3f0   : > { %v1302_v58 = vadd.f32 %v1301_v53, %v1300_v54  ;;  %v1305_v59 = vsel %vm1247_vm6, %v1294_v38, 0.0 }
 0x3f2   : > { %v1295_v57 = vld [vmem:[#allocation4 + $0x28] sm:$0xff]  ;;  %v1304_v60 = vadd.f32 %v1303_v56, %v1302_v58  ;;  %1277 = vadd.xlane.f32.xlu0 %v1276_v32 }
 0x3f3   : > { %v1296_v34 = vld [vmem:[#allocation4 + $0x30] sm:$0xff]  ;;  %v1307_v61 = vsel %vm1247_vm6, %v1295_v57, 0.0 }
 0x3f4   : > { %v1306_v62 = vadd.f32 %v1305_v59, %v1304_v60  ;;  %v1309_v63 = vsel %vm1247_vm6, %v1296_v34, 0.0 }
 0x3f6   : > { %v1297_v9 = vld [vmem:[#allocation4 + $0x38] sm:$0xff]  ;;  %v1308_v0 = vadd.f32 %v1307_v61, %v1306_v62 }
 0x3f7   : > { %v1311_v1 = vsel %vm1247_vm6, %v1297_v9, 0.0 }
 0x3f8   : > { %v1310_v28 = vadd.f32 %v1309_v63, %v1308_v0 }
 0x3fa   : > { %v1312_v2 = vadd.f32 %v1311_v1, %v1310_v28 }
 0x3fc   : > { %1313 = vadd.xlane.f32.xlu1 %v1312_v2 }
 0x47b   : > { %v1266_v36 = vpop.xlane.xlu0 %1265 }
 0x47c   : > { %v1267_v40 = vrot.slane %v1266_v36, 4 }
 0x47e   : > { %v1268_v43 = vadd.f32 %v1267_v40, %v1266_v36 }
 0x47f   : > { %v1278_v10 = vpop.xlane.xlu0 %1277 }
 0x480   : > { %v1269_v11 = vrot.slane %v1268_v43, 2  ;;  %v1279_v15 = vrot.slane %v1278_v10, 4 }
 0x482   : > { %v1280_v16 = vadd.f32 %v1279_v15, %v1278_v10  ;;  %v1270_v20 = vadd.f32 %v1269_v11, %v1268_v43 }
 0x484   : > { %v1281_v23 = vrot.slane %v1280_v16, 2  ;;  %v1271_v14 = vrot.slane %v1270_v20, 1 }
 0x486   : > { %v1282_v24 = vadd.f32 %v1281_v23, %v1280_v16  ;;  %v1272_v18 = vadd.f32 %v1271_v14, %v1270_v20 }
 0x488   : > { %1712 = vpush %v1272_v18  ;;  %v1283_v21 = vrot.slane %v1282_v24, 1 }
 0x489   : > { %v1314_v6 = vpop.xlane.xlu1 %1313 }
 0x48a   : > { %v1315_v7 = vrot.slane %v1314_v6, 4  ;;  %v1284_v19 = vadd.f32 %v1283_v21, %v1282_v24 }
 0x48c   : > { %v1316_v39 = vadd.f32 %v1315_v7, %v1314_v6  ;;  %1714 = vpush %v1284_v19 }
 0x48e   : > { %v1317_v8 = vrot.slane %v1316_v39, 2 }
 0x490   : > { %v1318_v13 = vadd.f32 %v1317_v8, %v1316_v39 }
 0x492   : > { %v1319_v12 = vrot.slane %v1318_v13, 1 }
 0x494   : > { %v1320_v27 = vadd.f32 %v1319_v12, %v1318_v13 }
 0x496   : > { %1716 = vpush %v1320_v27 }
 0x4b9   : > { %s1713_s18 = spop %1712 }
 0x4ba   : > { %s1274_s10 = smul.f32 16.0, %s1713_s18 }
 0x4bd   : > { %s1715_s21 = spop %1714 }
 0x4be   : > { %s1286_s30 = ssub.f32 %s1274_s10, %s1715_s21 }
 0x4c0   : > { %s1289_s9 = smul.f32 0.001953125, %s1286_s30 }
 0x4c7   : > { %s1717_s28 = spop %1716 }
 0x4c8   : > { %s1324_s11 = smul.f32 0.0011160715, %s1717_s28 }
 0x4ca   : > { %s1325_s27 = sadd.f32 %s1324_s11, %s1289_s9 }
 0x4cc   : > { %s1326_s13 = smul.f32 0.5, %s1325_s27 }
 0x4ce   : > { %1328 = sst [smem:[#allocation10]] %s1326_s13 }
 0x4cf PF: > { %p1734_p3 = scmp.eq.s32.totalorder %s2025_s22, 1  ;;  %s1914_s24 = scalar_lea.hbm %s2510_s5, 16 }
 0x4d0   : > { %p1915_p6 = scmp.ne.s32.totalorder %s2510_s5, %s1914_s24  ;;  %p1920_p9 = scmp.lt.u32.totalorder %s1914_s24, %s2510_s5 }
 0x4d2   : > { %p1916_p1 = pnand %p1915_p6, %p1734_p3 }
 0x4d4   : > { %p1917_p2 = pneg %p1916_p1 }
 0x4d6   : > { %p1922_p13 = pnand %p1920_p9, %p1917_p2 }
 0x4d8   : > { %1925 = shalt.err (!%p1922_p13)
}
 0x4d9   : > { %s1975_s29 = smov [#allocation10]  }
 0x4da   : > { %1723 = dma.smem_to_hbm (%p1734_p3), %s1975_s29, 16, %s2510_s5, [#allocation7]  }
 0x4db   : > { %1951 = dma.done.wait (%p1734_p3), [#allocation7], 16  }
 0x4dc   : > { %1953 = vsyncadd (%p1734_p3), [#allocation7], 4294967280 }
 0x4dd   : > { %1342 = sfence }
 0x4de PF: > { %p19_p4 = scmp.ge.s32.totalorder %s2028_s23, 4   ;;  %s2519_s18 = smov %s1960_s19 }
 0x4df   : > { %s2520_s19 = smov %s1964_s20  ;;  %s2521_s20 = smov %s2038_s26 }
 0x4e0   : > { %s2522_s21 = smov %s2028_s23  ;;  %21 = sbr.rel (!%p19_p4) target bundleno = 6 (0x6), region = 99 }
 0x4e7   :  { %1348 = vsyncpa [#allocation6], 1 }
 0x4e8   :  { %1350 = vsyncpa [#allocation6 + $0x1], 1 }
 0x4e9   :  { %1351 = vsyncpa [#allocation9], 1 }
 0x4ea   :  { %1353 = vsyncpa [#allocation9 + $0x1], 1 }
 0x4eb   :  { %1354 = vsyncpa [#allocation7], 1 }
 0x4ec   :  { %1356 = vsyncpa [#allocation7 + $0x1], 1 }

</bundles_post_ra>
